<compile_context>
chip_gen: v5e
topology: v5e:2x2
jax: 0.10.0
libtpu: 0.0.40
codegen_flags: <defaults>
</compile_context>

<pallas_src>
import functools

import jax
import jax.numpy as jnp
import numpy as np
from jax.experimental import pallas as pl
from jax.experimental.pallas import tpu as pltpu


# ------------------------- Pallas kernel -------------------------

def _make_conv_bn_relu_kernel(KH, KW, stride):
    """Fused KHxKW conv (as per-tap matmuls) + folded BN + ReLU for TH rows."""

    def kernel(x_ref, w_ref, s_ref, b_ref, o_ref):
        # x_ref: (Hp, Wp, Cin)   whole padded image of this batch element
        # w_ref: (KH*KW, Cin, Cout)
        # s_ref/b_ref: (1, Cout) folded BN scale / bias (f32)
        # o_ref: (TH, Wo, Cout)
        TH, Wo, Cout = o_ref.shape
        Cin = x_ref.shape[-1]

        j = pl.program_id(1)                 # which block of TH output rows
        row0 = j * (stride * TH)             # first padded-input row needed

        acc = jnp.zeros((TH * Wo, Cout), jnp.float32)
        for dy in range(KH):
            for dx in range(KW):
                if stride == 1:
                    patch = x_ref[pl.ds(row0 + dy, TH), pl.ds(dx, Wo), :]
                else:
                    patch = x_ref[pl.ds(row0 + dy, TH, stride=stride),
                                  pl.ds(dx, Wo, stride=stride), :]
                patch2d = patch.reshape(TH * Wo, Cin)
                acc = acc + jnp.dot(patch2d, w_ref[KW * dy + dx],
                                    preferred_element_type=jnp.float32)

        y = jnp.maximum(acc * s_ref[...] + b_ref[...], 0.0)
        o_ref[...] = y.reshape(TH, Wo, Cout).astype(o_ref.dtype)

    return kernel


# ------------------------- wrapper -------------------------

def conv_bn_relu_pallas(x_nchw, w_oihw, gamma, beta, mean, var, *,
                        stride=1, padding=0, eps=1e-5,
                        block_rows=8, compute_dtype=jnp.bfloat16):
    N, Cin, H, W = x_nchw.shape
    Cout, Cin_w, KH, KW = w_oihw.shape
    assert Cin_w == Cin

    # Fold eval-mode BN into per-channel scale/bias (wrapper-side constant math).
    scale = (gamma / jnp.sqrt(var + eps)).astype(jnp.float32)
    bias = (beta - mean * scale).astype(jnp.float32)

    Ho = (H + 2 * padding - KH) // stride + 1
    Wo = (W + 2 * padding - KW) // stride + 1
    TH = min(block_rows, Ho)
    n_row_blocks = pl.cdiv(Ho, TH)
    Ho_pad = n_row_blocks * TH

    # NCHW -> NHWC (channels on lanes), spatial zero-pad, cast MXU operands to bf16.
    x = jnp.transpose(x_nchw, (0, 2, 3, 1))
    rows_needed = stride * (Ho_pad - 1) + KH
    pad_bottom = max(padding, rows_needed - H - padding)
    x_pad = jnp.pad(x, ((0, 0), (padding, pad_bottom), (padding, padding), (0, 0)))
    x_pad = x_pad.astype(compute_dtype)
    Hp, Wp = x_pad.shape[1], x_pad.shape[2]

    # (Cout, Cin, KH, KW) -> (KH*KW, Cin, Cout) so each tap is a (Cin, Cout) matmul RHS.
    w = jnp.transpose(w_oihw, (2, 3, 1, 0)).reshape(KH * KW, Cin, Cout)
    w = w.astype(compute_dtype)
    s2d = scale.reshape(1, Cout)
    b2d = bias.reshape(1, Cout)

    kernel = _make_conv_bn_relu_kernel(KH, KW, stride)

    out = pl.pallas_call(
        kernel,
        out_shape=jax.ShapeDtypeStruct((N, Ho_pad, Wo, Cout), jnp.float32),
        grid=(N, n_row_blocks),
        in_specs=[
            # Whole padded image per batch element; block index is constant in j,
            # so the slab is DMA'd once per image and stays resident in VMEM.
            pl.BlockSpec((None, Hp, Wp, Cin), lambda n, j: (n, 0, 0, 0)),
            pl.BlockSpec((KH * KW, Cin, Cout), lambda n, j: (0, 0, 0)),
            pl.BlockSpec((1, Cout), lambda n, j: (0, 0)),
            pl.BlockSpec((1, Cout), lambda n, j: (0, 0)),
        ],
        out_specs=pl.BlockSpec((None, TH, Wo, Cout), lambda n, j: (n, j, 0, 0)),
        compiler_params=pltpu.CompilerParams(
            dimension_semantics=("parallel", "parallel"),
            # Explicit, modest limit: blocks here are << 1 MiB; stays well inside
            # v7x's 64 MiB physical VMEM as well as v5e/v6e scoped defaults.
            vmem_limit_bytes=32 * 1024 * 1024,
        ),
    )(x_pad, w, s2d, b2d)

    out = out[:, :Ho]                          # drop row-block padding, if any
    return jnp.transpose(out, (0, 3, 1, 2))    # back to NCHW


# ------------------------- pure-JAX reference -------------------------

def conv_bn_relu_ref(x_nchw, w_oihw, gamma, beta, mean, var, *,
                     stride=1, padding=0, eps=1e-5,
                     compute_dtype=jnp.bfloat16):
    """Reference with the same operand-precision policy as the kernel
    (bf16 conv operands, f32 accumulation), so the check isolates kernel
    correctness rather than bf16 rounding of the inputs."""
    y = jax.lax.conv_general_dilated(
        x_nchw.astype(compute_dtype), w_oihw.astype(compute_dtype),
        window_strides=(stride, stride),
        padding=[(padding, padding), (padding, padding)],
        dimension_numbers=("NCHW", "OIHW", "NCHW"),
        preferred_element_type=jnp.float32)
    scale = gamma / jnp.sqrt(var + eps)
    bias = beta - mean * scale
    y = y * scale[None, :, None, None] + bias[None, :, None, None]
    return jnp.maximum(y, 0.0)


# ------------------------- main -------------------------

if __name__ == "__main__":
    key = jax.random.PRNGKey(0)
    kx, kw, kg, kb, km, kv = jax.random.split(key, 6)

    # Small but lane-friendly shapes: Cout multiple of 128 -> lane-dense stores.
    N, Cin, H, W = 2, 32, 16, 16
    Cout, K, stride, padding = 128, 3, 1, 1

    x = jax.random.normal(kx, (N, Cin, H, W), jnp.float32)
    fan_in = Cin * K * K
    w = jax.random.normal(kw, (Cout, Cin, K, K), jnp.float32) / np.sqrt(fan_in)
    gamma = 1.0 + 0.1 * jax.random.normal(kg, (Cout,), jnp.float32)
    beta = 0.1 * jax.random.normal(kb, (Cout,), jnp.float32)
    mean = 0.1 * jax.random.normal(km, (Cout,), jnp.float32)
    var = jax.random.uniform(kv, (Cout,), jnp.float32, minval=0.5, maxval=1.5)

    conv_fn = jax.jit(functools.partial(
        conv_bn_relu_pallas, stride=stride, padding=padding, block_rows=8))

    out = conv_fn(x, w, gamma, beta, mean, var)
    out = jax.block_until_ready(out)

    ref = conv_bn_relu_ref(x, w, gamma, beta, mean, var,
                           stride=stride, padding=padding)
    np.testing.assert_allclose(np.asarray(out), np.asarray(ref),
                               atol=1e-2, rtol=1e-2)
    print("KERNEL_OK")
</pallas_src>

<mosaic_0001>
module attributes {stable_mosaic.version = 11 : i64} {
  func.func @kernel(%arg0: i32, %arg1: i32, %arg2: memref<1x18x18x32xbf16, #tpu.memory_space<vmem>>, %arg3: memref<9x32x128xbf16, #tpu.memory_space<vmem>>, %arg4: memref<1x128xf32, #tpu.memory_space<vmem>>, %arg5: memref<1x128xf32, #tpu.memory_space<vmem>>, %arg6: memref<1x8x16x128xf32, #tpu.memory_space<vmem>>) attributes {dimension_semantics = [#tpu.dimension_semantics<parallel>, #tpu.dimension_semantics<parallel>], iteration_bounds = array<i64: 2, 2>, scalar_prefetch = 0 : i64, scratch_operands = 0 : i64, tpu.core_type = #tpu.core_type<tc>, window_params = [{transform_indices = @transform_0, window_bounds = array<i64: 1, 18, 18, 32>}, {pipeline_mode = #tpu.pipeline_mode<synchronous>, transform_indices = @transform_1, window_bounds = array<i64: 9, 32, 128>}, {pipeline_mode = #tpu.pipeline_mode<synchronous>, transform_indices = @transform_2, window_bounds = array<i64: 1, 128>}, {pipeline_mode = #tpu.pipeline_mode<synchronous>, transform_indices = @transform_3, window_bounds = array<i64: 1, 128>}, {transform_indices = @transform_4, window_bounds = array<i64: 1, 8, 16, 128>}]} {
    %c8_i32 = arith.constant 8 : i32
    %0 = arith.muli %arg1, %c8_i32 : i32
    %cst = arith.constant 0.000000e+00 : f32
    %1 = vector.broadcast %cst : f32 to vector<128x128xf32>
    %c0_i32 = arith.constant 0 : i32
    %2 = arith.addi %0, %c0_i32 : i32
    %c0 = arith.constant 0 : index
    %3 = arith.index_cast %2 : i32 to index
    %c0_0 = arith.constant 0 : index
    %c0_1 = arith.constant 0 : index
    %4 = vector.load %arg2[%c0, %3, %c0_0, %c0_1] : memref<1x18x18x32xbf16, #tpu.memory_space<vmem>>, vector<1x8x16x32xbf16>
    %5 = vector.shape_cast %4 : vector<1x8x16x32xbf16> to vector<8x16x32xbf16>
    %6 = vector.shape_cast %5 : vector<8x16x32xbf16> to vector<128x32xbf16>
    %c0_2 = arith.constant 0 : index
    %c0_3 = arith.constant 0 : index
    %c0_4 = arith.constant 0 : index
    %7 = vector.load %arg3[%c0_2, %c0_3, %c0_4] : memref<9x32x128xbf16, #tpu.memory_space<vmem>>, vector<1x32x128xbf16>
    %8 = vector.shape_cast %7 : vector<1x32x128xbf16> to vector<32x128xbf16>
    %cst_5 = arith.constant dense<0.000000e+00> : vector<128x128xf32>
    %9 = tpu.matmul %6, %8, %cst_5 {dimension_numbers = #tpu.dot_dimension_numbers<[1], [0], [0], [1], [0, 0, 1, 1], [], []>} : vector<128x32xbf16>, vector<32x128xbf16>, vector<128x128xf32> -> vector<128x128xf32>
    %10 = arith.addf %1, %9 : vector<128x128xf32>
    %c0_i32_6 = arith.constant 0 : i32
    %11 = arith.addi %0, %c0_i32_6 : i32
    %c0_7 = arith.constant 0 : index
    %12 = arith.index_cast %11 : i32 to index
    %c1 = arith.constant 1 : index
    %c0_8 = arith.constant 0 : index
    %13 = vector.load %arg2[%c0_7, %12, %c1, %c0_8] : memref<1x18x18x32xbf16, #tpu.memory_space<vmem>>, vector<1x8x16x32xbf16>
    %14 = vector.shape_cast %13 : vector<1x8x16x32xbf16> to vector<8x16x32xbf16>
    %15 = vector.shape_cast %14 : vector<8x16x32xbf16> to vector<128x32xbf16>
    %c1_9 = arith.constant 1 : index
    %c0_10 = arith.constant 0 : index
    %c0_11 = arith.constant 0 : index
    %16 = vector.load %arg3[%c1_9, %c0_10, %c0_11] : memref<9x32x128xbf16, #tpu.memory_space<vmem>>, vector<1x32x128xbf16>
    %17 = vector.shape_cast %16 : vector<1x32x128xbf16> to vector<32x128xbf16>
    %cst_12 = arith.constant dense<0.000000e+00> : vector<128x128xf32>
    %18 = tpu.matmul %15, %17, %cst_12 {dimension_numbers = #tpu.dot_dimension_numbers<[1], [0], [0], [1], [0, 0, 1, 1], [], []>} : vector<128x32xbf16>, vector<32x128xbf16>, vector<128x128xf32> -> vector<128x128xf32>
    %19 = arith.addf %10, %18 : vector<128x128xf32>
    %c0_i32_13 = arith.constant 0 : i32
    %20 = arith.addi %0, %c0_i32_13 : i32
    %c0_14 = arith.constant 0 : index
    %21 = arith.index_cast %20 : i32 to index
    %c2 = arith.constant 2 : index
    %c0_15 = arith.constant 0 : index
    %22 = vector.load %arg2[%c0_14, %21, %c2, %c0_15] : memref<1x18x18x32xbf16, #tpu.memory_space<vmem>>, vector<1x8x16x32xbf16>
    %23 = vector.shape_cast %22 : vector<1x8x16x32xbf16> to vector<8x16x32xbf16>
    %24 = vector.shape_cast %23 : vector<8x16x32xbf16> to vector<128x32xbf16>
    %c2_16 = arith.constant 2 : index
    %c0_17 = arith.constant 0 : index
    %c0_18 = arith.constant 0 : index
    %25 = vector.load %arg3[%c2_16, %c0_17, %c0_18] : memref<9x32x128xbf16, #tpu.memory_space<vmem>>, vector<1x32x128xbf16>
    %26 = vector.shape_cast %25 : vector<1x32x128xbf16> to vector<32x128xbf16>
    %cst_19 = arith.constant dense<0.000000e+00> : vector<128x128xf32>
    %27 = tpu.matmul %24, %26, %cst_19 {dimension_numbers = #tpu.dot_dimension_numbers<[1], [0], [0], [1], [0, 0, 1, 1], [], []>} : vector<128x32xbf16>, vector<32x128xbf16>, vector<128x128xf32> -> vector<128x128xf32>
    %28 = arith.addf %19, %27 : vector<128x128xf32>
    %c1_i32 = arith.constant 1 : i32
    %29 = arith.addi %0, %c1_i32 : i32
    %c0_20 = arith.constant 0 : index
    %30 = arith.index_cast %29 : i32 to index
    %c0_21 = arith.constant 0 : index
    %c0_22 = arith.constant 0 : index
    %31 = vector.load %arg2[%c0_20, %30, %c0_21, %c0_22] : memref<1x18x18x32xbf16, #tpu.memory_space<vmem>>, vector<1x8x16x32xbf16>
    %32 = vector.shape_cast %31 : vector<1x8x16x32xbf16> to vector<8x16x32xbf16>
    %33 = vector.shape_cast %32 : vector<8x16x32xbf16> to vector<128x32xbf16>
    %c3 = arith.constant 3 : index
    %c0_23 = arith.constant 0 : index
    %c0_24 = arith.constant 0 : index
    %34 = vector.load %arg3[%c3, %c0_23, %c0_24] : memref<9x32x128xbf16, #tpu.memory_space<vmem>>, vector<1x32x128xbf16>
    %35 = vector.shape_cast %34 : vector<1x32x128xbf16> to vector<32x128xbf16>
    %cst_25 = arith.constant dense<0.000000e+00> : vector<128x128xf32>
    %36 = tpu.matmul %33, %35, %cst_25 {dimension_numbers = #tpu.dot_dimension_numbers<[1], [0], [0], [1], [0, 0, 1, 1], [], []>} : vector<128x32xbf16>, vector<32x128xbf16>, vector<128x128xf32> -> vector<128x128xf32>
    %37 = arith.addf %28, %36 : vector<128x128xf32>
    %c1_i32_26 = arith.constant 1 : i32
    %38 = arith.addi %0, %c1_i32_26 : i32
    %c0_27 = arith.constant 0 : index
    %39 = arith.index_cast %38 : i32 to index
    %c1_28 = arith.constant 1 : index
    %c0_29 = arith.constant 0 : index
    %40 = vector.load %arg2[%c0_27, %39, %c1_28, %c0_29] : memref<1x18x18x32xbf16, #tpu.memory_space<vmem>>, vector<1x8x16x32xbf16>
    %41 = vector.shape_cast %40 : vector<1x8x16x32xbf16> to vector<8x16x32xbf16>
    %42 = vector.shape_cast %41 : vector<8x16x32xbf16> to vector<128x32xbf16>
    %c4 = arith.constant 4 : index
    %c0_30 = arith.constant 0 : index
    %c0_31 = arith.constant 0 : index
    %43 = vector.load %arg3[%c4, %c0_30, %c0_31] : memref<9x32x128xbf16, #tpu.memory_space<vmem>>, vector<1x32x128xbf16>
    %44 = vector.shape_cast %43 : vector<1x32x128xbf16> to vector<32x128xbf16>
    %cst_32 = arith.constant dense<0.000000e+00> : vector<128x128xf32>
    %45 = tpu.matmul %42, %44, %cst_32 {dimension_numbers = #tpu.dot_dimension_numbers<[1], [0], [0], [1], [0, 0, 1, 1], [], []>} : vector<128x32xbf16>, vector<32x128xbf16>, vector<128x128xf32> -> vector<128x128xf32>
    %46 = arith.addf %37, %45 : vector<128x128xf32>
    %c1_i32_33 = arith.constant 1 : i32
    %47 = arith.addi %0, %c1_i32_33 : i32
    %c0_34 = arith.constant 0 : index
    %48 = arith.index_cast %47 : i32 to index
    %c2_35 = arith.constant 2 : index
    %c0_36 = arith.constant 0 : index
    %49 = vector.load %arg2[%c0_34, %48, %c2_35, %c0_36] : memref<1x18x18x32xbf16, #tpu.memory_space<vmem>>, vector<1x8x16x32xbf16>
    %50 = vector.shape_cast %49 : vector<1x8x16x32xbf16> to vector<8x16x32xbf16>
    %51 = vector.shape_cast %50 : vector<8x16x32xbf16> to vector<128x32xbf16>
    %c5 = arith.constant 5 : index
    %c0_37 = arith.constant 0 : index
    %c0_38 = arith.constant 0 : index
    %52 = vector.load %arg3[%c5, %c0_37, %c0_38] : memref<9x32x128xbf16, #tpu.memory_space<vmem>>, vector<1x32x128xbf16>
    %53 = vector.shape_cast %52 : vector<1x32x128xbf16> to vector<32x128xbf16>
    %cst_39 = arith.constant dense<0.000000e+00> : vector<128x128xf32>
    %54 = tpu.matmul %51, %53, %cst_39 {dimension_numbers = #tpu.dot_dimension_numbers<[1], [0], [0], [1], [0, 0, 1, 1], [], []>} : vector<128x32xbf16>, vector<32x128xbf16>, vector<128x128xf32> -> vector<128x128xf32>
    %55 = arith.addf %46, %54 : vector<128x128xf32>
    %c2_i32 = arith.constant 2 : i32
    %56 = arith.addi %0, %c2_i32 : i32
    %c0_40 = arith.constant 0 : index
    %57 = arith.index_cast %56 : i32 to index
    %c0_41 = arith.constant 0 : index
    %c0_42 = arith.constant 0 : index
    %58 = vector.load %arg2[%c0_40, %57, %c0_41, %c0_42] : memref<1x18x18x32xbf16, #tpu.memory_space<vmem>>, vector<1x8x16x32xbf16>
    %59 = vector.shape_cast %58 : vector<1x8x16x32xbf16> to vector<8x16x32xbf16>
    %60 = vector.shape_cast %59 : vector<8x16x32xbf16> to vector<128x32xbf16>
    %c6 = arith.constant 6 : index
    %c0_43 = arith.constant 0 : index
    %c0_44 = arith.constant 0 : index
    %61 = vector.load %arg3[%c6, %c0_43, %c0_44] : memref<9x32x128xbf16, #tpu.memory_space<vmem>>, vector<1x32x128xbf16>
    %62 = vector.shape_cast %61 : vector<1x32x128xbf16> to vector<32x128xbf16>
    %cst_45 = arith.constant dense<0.000000e+00> : vector<128x128xf32>
    %63 = tpu.matmul %60, %62, %cst_45 {dimension_numbers = #tpu.dot_dimension_numbers<[1], [0], [0], [1], [0, 0, 1, 1], [], []>} : vector<128x32xbf16>, vector<32x128xbf16>, vector<128x128xf32> -> vector<128x128xf32>
    %64 = arith.addf %55, %63 : vector<128x128xf32>
    %c2_i32_46 = arith.constant 2 : i32
    %65 = arith.addi %0, %c2_i32_46 : i32
    %c0_47 = arith.constant 0 : index
    %66 = arith.index_cast %65 : i32 to index
    %c1_48 = arith.constant 1 : index
    %c0_49 = arith.constant 0 : index
    %67 = vector.load %arg2[%c0_47, %66, %c1_48, %c0_49] : memref<1x18x18x32xbf16, #tpu.memory_space<vmem>>, vector<1x8x16x32xbf16>
    %68 = vector.shape_cast %67 : vector<1x8x16x32xbf16> to vector<8x16x32xbf16>
    %69 = vector.shape_cast %68 : vector<8x16x32xbf16> to vector<128x32xbf16>
    %c7 = arith.constant 7 : index
    %c0_50 = arith.constant 0 : index
    %c0_51 = arith.constant 0 : index
    %70 = vector.load %arg3[%c7, %c0_50, %c0_51] : memref<9x32x128xbf16, #tpu.memory_space<vmem>>, vector<1x32x128xbf16>
    %71 = vector.shape_cast %70 : vector<1x32x128xbf16> to vector<32x128xbf16>
    %cst_52 = arith.constant dense<0.000000e+00> : vector<128x128xf32>
    %72 = tpu.matmul %69, %71, %cst_52 {dimension_numbers = #tpu.dot_dimension_numbers<[1], [0], [0], [1], [0, 0, 1, 1], [], []>} : vector<128x32xbf16>, vector<32x128xbf16>, vector<128x128xf32> -> vector<128x128xf32>
    %73 = arith.addf %64, %72 : vector<128x128xf32>
    %c2_i32_53 = arith.constant 2 : i32
    %74 = arith.addi %0, %c2_i32_53 : i32
    %c0_54 = arith.constant 0 : index
    %75 = arith.index_cast %74 : i32 to index
    %c2_55 = arith.constant 2 : index
    %c0_56 = arith.constant 0 : index
    %76 = vector.load %arg2[%c0_54, %75, %c2_55, %c0_56] : memref<1x18x18x32xbf16, #tpu.memory_space<vmem>>, vector<1x8x16x32xbf16>
    %77 = vector.shape_cast %76 : vector<1x8x16x32xbf16> to vector<8x16x32xbf16>
    %78 = vector.shape_cast %77 : vector<8x16x32xbf16> to vector<128x32xbf16>
    %c8 = arith.constant 8 : index
    %c0_57 = arith.constant 0 : index
    %c0_58 = arith.constant 0 : index
    %79 = vector.load %arg3[%c8, %c0_57, %c0_58] : memref<9x32x128xbf16, #tpu.memory_space<vmem>>, vector<1x32x128xbf16>
    %80 = vector.shape_cast %79 : vector<1x32x128xbf16> to vector<32x128xbf16>
    %cst_59 = arith.constant dense<0.000000e+00> : vector<128x128xf32>
    %81 = tpu.matmul %78, %80, %cst_59 {dimension_numbers = #tpu.dot_dimension_numbers<[1], [0], [0], [1], [0, 0, 1, 1], [], []>} : vector<128x32xbf16>, vector<32x128xbf16>, vector<128x128xf32> -> vector<128x128xf32>
    %82 = arith.addf %73, %81 : vector<128x128xf32>
    %c0_60 = arith.constant 0 : index
    %c0_61 = arith.constant 0 : index
    %83 = vector.load %arg4[%c0_60, %c0_61] : memref<1x128xf32, #tpu.memory_space<vmem>>, vector<1x128xf32>
    %84 = vector.broadcast %83 : vector<1x128xf32> to vector<128x128xf32>
    %85 = arith.mulf %82, %84 : vector<128x128xf32>
    %c0_62 = arith.constant 0 : index
    %c0_63 = arith.constant 0 : index
    %86 = vector.load %arg5[%c0_62, %c0_63] : memref<1x128xf32, #tpu.memory_space<vmem>>, vector<1x128xf32>
    %87 = vector.broadcast %86 : vector<1x128xf32> to vector<128x128xf32>
    %88 = arith.addf %85, %87 : vector<128x128xf32>
    %cst_64 = arith.constant 0.000000e+00 : f32
    %89 = vector.broadcast %cst_64 : f32 to vector<128x128xf32>
    %90 = arith.maximumf %88, %89 : vector<128x128xf32>
    %91 = vector.shape_cast %90 : vector<128x128xf32> to vector<8x16x128xf32>
    %c0_65 = arith.constant 0 : index
    %c0_66 = arith.constant 0 : index
    %c0_67 = arith.constant 0 : index
    %c0_68 = arith.constant 0 : index
    %92 = vector.load %arg6[%c0_65, %c0_66, %c0_67, %c0_68] : memref<1x8x16x128xf32, #tpu.memory_space<vmem>>, vector<1x8x16x128xf32>
    %93 = vector.shape_cast %92 : vector<1x8x16x128xf32> to vector<8x16x128xf32>
    %94 = vector.shape_cast %91 : vector<8x16x128xf32> to vector<1x8x16x128xf32>
    tpu.vector_store %arg6[%c0_65, %c0_66, %c0_67, %c0_68], %94 {strides = array<i32>} : memref<1x8x16x128xf32, #tpu.memory_space<vmem>>, vector<1x8x16x128xf32>,
    return
  }
  func.func @transform_0(%arg0: i32, %arg1: i32) -> (i32, i32, i32, i32) {
    %c0_i32 = arith.constant 0 : i32
    %c0_i32_0 = arith.constant 0 : i32
    %c0_i32_1 = arith.constant 0 : i32
    %c0_i32_2 = arith.constant 0 : i32
    return %arg0, %c0_i32, %c0_i32_0, %c0_i32_1 : i32, i32, i32, i32
  }
  func.func @transform_1(%arg0: i32, %arg1: i32) -> (i32, i32, i32) {
    %c0_i32 = arith.constant 0 : i32
    %c0_i32_0 = arith.constant 0 : i32
    %c0_i32_1 = arith.constant 0 : i32
    %c0_i32_2 = arith.constant 0 : i32
    return %c0_i32, %c0_i32_0, %c0_i32_1 : i32, i32, i32
  }
  func.func @transform_2(%arg0: i32, %arg1: i32) -> (i32, i32) {
    %c0_i32 = arith.constant 0 : i32
    %c0_i32_0 = arith.constant 0 : i32
    %c0_i32_1 = arith.constant 0 : i32
    return %c0_i32, %c0_i32_0 : i32, i32
  }
  func.func @transform_3(%arg0: i32, %arg1: i32) -> (i32, i32) {
    %c0_i32 = arith.constant 0 : i32
    %c0_i32_0 = arith.constant 0 : i32
    %c0_i32_1 = arith.constant 0 : i32
    return %c0_i32, %c0_i32_0 : i32, i32
  }
  func.func @transform_4(%arg0: i32, %arg1: i32) -> (i32, i32, i32, i32) {
    %c0_i32 = arith.constant 0 : i32
    %c0_i32_0 = arith.constant 0 : i32
    %c0_i32_1 = arith.constant 0 : i32
    return %arg0, %arg1, %c0_i32, %c0_i32_0 : i32, i32, i32, i32
  }
}

</mosaic_0001>

<bundles_post_ra>
// kernel: conv_bn_relu_pallas.1
= control target key start
LH: loop header
LB: loop body
LE: loop exit
PB: predicated region body
PF: predicated region fallthrough
CT: control target
= control target key end

     0   :  { %9 = vsyncpa [#allocation3], 0  ;;  %s4130_s0 = inlined_call_operand.vmem [shape: bf16[2,18,18,32], index: 0, kind: input, shape index: {}]   ;;  %s4131_s1 = inlined_call_operand.vmem [shape: bf16[9,32,128], index: 1, kind: input, shape index: {}]   ;;  %s4132_s2 = inlined_call_operand.vmem [shape: f32[1,128], index: 2, kind: input, shape index: {}]   ;;  %s4133_s3 = inlined_call_operand.vmem [shape: f32[1,128], index: 3, kind: input, shape index: {}]   ;;  %s4134_s4 = inlined_call_operand.hbm [shape: f32[2,16,16,128], index: 4, kind: output, shape index: {}]  }
   0x1   :  { %11 = vsyncpa [#allocation3 + $0x1], 0  ;;  %s3191_s15 = smov 0   ;;  %s3193_s16 = smov 0  }
   0x2   :  { %s3195_s17 = smov 0   ;;  %s3197_s18 = smov 0  }
   0x3   :  { %s3199_s19 = smov 0   ;;  %s3201_s20 = smov 0  }
   0x4   :  { %s3203_s21 = smov 0   ;;  %s3205_s22 = smov 0  }
   0x5 LB: > { %s2529_s23 = sadd.s32 4294967295, %s3162_s22   ;;  %s2530_s24 = sadd.s32 4294967294, %s3162_s22   ;;  %s3162_s22 = sphi %s3205_s22, %s17_s22   ;;  %s3158_s21 = sphi %s3203_s21, %s4147_s21   ;;  %s3154_s20 = sphi %s3201_s20, %s4146_s20   ;;  %s3150_s19 = sphi %s3199_s19, %s4145_s19   ;;  %s3146_s18 = sphi %s3197_s18, %s4144_s18   ;;  %s3142_s17 = sphi %s3195_s17, %s4143_s17   ;;  %s3138_s16 = sphi %s3193_s16, %s4142_s16   ;;  %s3134_s15 = sphi %s3191_s15, %s4141_s15  }
   0x6   : > { %s26_s25 = sadd.s32 1, %s3154_s20  ;;  %s29_s26 = sadd.s32 1, %s3158_s21 }
   0x7   : > { %p27_p0 = scmp.ge.s32.totalorder %s26_s25, 2  ;;  %p137_p1 = scmp.ne.s32.totalorder %s3142_s17, %s3138_s16 }
   0x8   : > { %p138_p2 = scmp.eq.s32.totalorder %s2529_s23, 3  ;;  %p143_p5 = scmp.ne.s32.totalorder %s3138_s16, %s3134_s15 }
   0x9   : > { %s4149_s25 = smov (%p27_p0, %s26_s25), 0  ;;  %s4151_s26 = smov (!%p27_p0, %s29_s26), %s3158_s21 }
   0xa   : > { %s123_s27 = ssub.s32 %s3154_s20, %s4149_s25  ;;  %p3242_p3 = por %p138_p2, %p137_p1 }
   0xb   : > { %p31_p4 = scmp.ge.s32.totalorder %s4151_s26, 2  ;;  %p144_p6 = scmp.eq.s32.totalorder %s2530_s24, 3 }
   0xc   : > { %p2533_p7 = scmp.ge.s32.totalorder %s3162_s22, 1  ;;  %p179_p9 = scmp.lt.s32.totalorder %s3162_s22, 5 }
   0xd   : > { %s4153_s26 = smov (%p31_p4, %s4151_s26), 0  ;;  %p3251_p8 = por %p144_p6, %p143_p5 }
   0xe   : > { %s122_s30 = ssub.s32 %s3158_s21, %s4153_s26  ;;  %s127_s5 = sadd.s32 1, %s3142_s17 }
   0xf   : > { %s124_s6 = sor.u32 %s123_s27, %s122_s30  ;;  %p180_p10 = pnand %p2533_p7, %p179_p9 }
  0x10   : > { %p125_p11 = scmp.eq.s32.totalorder %s124_s6, 0  ;;  %p205_p12 = scmp.lt.s32.totalorder (!%p180_p10), %s3150_s19, 1 }
  0x11   : > { %183 = sbr.rel (%p180_p10) target bundleno = 480 (0x1e0), region = 36  ;;  %s2985_s6 = sshll.u32 (!%p180_p10), %s3146_s18, 4 }
  0x12   : > { %s3260_s7 = scalar_select %p125_p11, %s3142_s17, %s127_s5  }
  0x13   : > { %s2942_s13 = smul.u32 (!%p180_p10), 96, %s3146_s18  ;;  %s2938_s8 = sshll.u32 (!%p180_p10), %s3150_s19, 5 }
  0x14   : > { %s2437_s9 = sadd.s32 (!%p180_p10), %s2985_s6, %s2938_s8  ;;  %s3088_s8 = scalar_lea.hbm (!%p180_p10), %s4134_s4, 512 }
  0x15   : > { %s2939_s10 = sshll.u32 (!%p180_p10), %s2437_s9, 3 }
  0x16   : > { %v2954_v0 = vld [vmem:[%s4131_s1 + $0x18] sm:$0xff]  ;;  %v2953_v1 = vld [vmem:[%s4131_s1 + $0x10] sm:$0xff]  ;;  %s206_s12 = scalar_select %p205_p12, %s3150_s19, 1  ;;  %v2956_v2 = vld [vmem:[%s4131_s1 + $0x28] sm:$0xff]  ;;  %vm244_vm0 = vsmask.f32 3328 }
  0x17   : > { %2986 = vmatpush.bf16.msra.mxu1 %v2954_v0  ;;  %2987 = vmatpush.bf16.msra.mxu2 %v2954_v0  ;;  %v2966_v3 = vld [vmem:[%s4131_s1 + $0x38] sm:$0xff]  ;;  %v2952_v4 = vld [vmem:[%s4131_s1 + $0x8] sm:$0xff]  ;;  %vm245_vm1 = vsmask.f32 7440  ;;  %vm480_vm2 = vcmask 261120   ;;  %v2955_v55 = vld [vmem:[%s4131_s1 + $0x20] sm:$0xff]  ;;  %s2439_s11 = scalar_lea.hbm %s4134_s4, %s2939_s10 }
  0x18   : > { %2988 = vmatpush.bf16.msra.mxu3 %v2954_v0  ;;  %511 = vmatpush.bf16.msra.mxu0 %v2954_v0  ;;  %s2992_s14 = smul.u32 216, %s206_s12  ;;  %v2968_v5 = vld [vmem:[%s4131_s1 + $0x48] sm:$0xff]  ;;  %vm3314_vm3 = vmor %vm244_vm0, %vm245_vm1  ;;  %vm703_vm4 = vcmask 1042432   ;;  %vm704_vm5 = vcmask 1046532  }
  0x19   : > { %vm3440_vm6 = vmor %vm703_vm4, %vm704_vm5 }
  0x1a   : > { %s209_s12 = scalar_lea.vmem %s4130_s0, %s2992_s14  ;;  %s202_s14 = sand.u32 1, %s3138_s16  }
  0x1b   : > { %2989 = vmatpush.bf16.msra.mxu1 %v2953_v1  ;;  %2990 = vmatpush.bf16.msra.mxu2 %v2953_v1  ;;  %s3286_s23 = scalar_lea.vmem %s209_s12, %s2942_s13  ;;  %s2534_s30 = sshll.u32 %s202_s14, 7 }
  0x1c   : > { %2991 = vmatpush.bf16.msra.mxu3 %v2953_v1  ;;  %512 = vmatpush.bf16.msra.mxu0 %v2953_v1  ;;  %v220_v6 = vld [vmem:[%s3286_s23 + $0x18] sm:$0xf]  ;;  %v3290_v7 = vld [vmem:[%s3286_s23 + $0x1c] sm:$0xf]  ;;  %v3293_v8 = vld [vmem:[%s3286_s23 + $0x20] sm:$0x1] }
  0x1d   : > { %v296_v9 = vshrl.u32 %v220_v6, 16  ;;  %v299_v10 = vshll.u32 %v220_v6, 16  ;;  %v305_v11 = vshll.u32 %v3290_v7, 16  ;;  %v309_v12 = vshrl.u32 %v3290_v7, 16  ;;  %v224_v13 = vld [vmem:[%s3286_s23 + $0x30] sm:$0xf] }
  0x1e   : > { %v315_v14 = vshll.u32 %v3293_v8, 16  ;;  %v3300_v15 = vld [vmem:[%s3286_s23 + $0x34] sm:$0xf]  ;;  %v3303_v16 = vld [vmem:[%s3286_s23 + $0x38] sm:$0x1]  ;;  %v344_v17 = vshrl.u32 %v224_v13, 16 }
  0x1f   : > { %833 = vmatpush.bf16.msrb.mxu2 %v2956_v2  ;;  %636 = vmatpush.bf16.msrb.mxu1 %v2952_v4  ;;  %v298_v18 = vrot.slane %v296_v9, 4  ;;  %v301_v19 = vrot.slane %v299_v10, 5  ;;  %v307_v20 = vrot.slane %v305_v11, 5  ;;  %v311_v21 = vrot.slane %v309_v12, 4  ;;  %v228_v22 = vld [vmem:[%s3286_s23 + $0x48] sm:$0xf] }
  0x20   : > { %999 = vmatpush.bf16.msrb.mxu3 %v2966_v3  ;;  %1345 = vmatpush.bf16.msrb.mxu0 %v2968_v5  ;;  %v317_v23 = vrot.slane %v315_v14, 5  ;;  %v346_v24 = vrot.slane %v344_v17, 4  ;;  %v347_v25 = vshll.u32 %v224_v13, 16  ;;  %v353_v26 = vshll.u32 %v3300_v15, 16  ;;  %v3310_v31 = vld [vmem:[%s3286_s23 + $0x4c] sm:$0xf] }
  0x21   : > { %v302_v27 = vor.u32 %v301_v19, %v298_v18  ;;  %v312_v28 = vor.u32 %v311_v21, %v307_v20  ;;  %v357_v29 = vshrl.u32 %v3300_v15, 16  ;;  %v363_v30 = vshll.u32 %v3303_v16, 16  ;;  %v3319_v42 = vld [vmem:[%s3286_s23 + $0x50] sm:$0x1]  ;;  %v216_v50 = vld [vmem:[%s3286_s23] sm:$0xf] }
  0x22   : > { %v349_v33 = vrot.slane %v347_v25, 5  ;;  %v355_v34 = vrot.slane %v353_v26, 5  ;;  %v392_v35 = vshrl.u32 %v228_v22, 16  ;;  %v395_v36 = vshll.u32 %v228_v22, 16  ;;  %v3335_v63 = vld [vmem:[%s3286_s23 + $0x4] sm:$0xf] }
  0x23   : > { %v303_v37 = vrot.slane %v302_v27, 4  ;;  %v313_v38 = vrot.slane %v312_v28, 4  ;;  %v359_v39 = vrot.slane %v357_v29, 4  ;;  %v365_v40 = vrot.slane %v363_v30, 5  ;;  %834 = vmatpush.bf16.msrb.mxu2 %v2955_v55  ;;  %v3340_v5 = vld [vmem:[%s3286_s23 + $0x8] sm:$0x1] }
  0x24   : > { %v350_v41 = vor.u32 %v349_v33, %v346_v24  ;;  %v394_v43 = vrot.slane %v392_v35, 4  ;;  %v397_v44 = vrot.slane %v395_v36, 5  ;;  %v401_v45 = vshll.u32 %v3310_v31, 16  ;;  %v222_v12 = vld [vmem:[%s3286_s23 + $0x24] sm:$0xf]  ;;  %v2965_v19 = vld [vmem:[%s4131_s1 + $0x30] sm:$0xff] }
  0x25   : > { %v308_v46 = vsel %vm3314_vm3, %v303_v37, %v307_v20  ;;  %v318_v47 = vsel %vm3314_vm3, %v313_v38, %v317_v23  ;;  %v360_v48 = vor.u32 %v359_v39, %v355_v34  ;;  %v405_v49 = vshrl.u32 %v3310_v31, 16  ;;  %v2951_v20 = vld [vmem:[%s4131_s1] sm:$0xff]  ;;  %v3360_v26 = vld [vmem:[%s3286_s23 + $0x28] sm:$0xf]  ;;  %v3365_v30 = vld [vmem:[%s3286_s23 + $0x2c] sm:$0x1]  ;;  %1000 = vmatpush.bf16.msrb.mxu3 %v2965_v19 }
  0x26   : > { %v448_v51 = vunpack.c.l.b16 %v308_v46  ;;  %v449_v52 = vunpack.c.l.b16 %v318_v47  ;;  %v351_v53 = vrot.slane %v350_v41, 4  ;;  %v398_v54 = vor.u32 %v397_v44, %v394_v43  ;;  %v2967_v21 = vld [vmem:[%s4131_s1 + $0x40] sm:$0xff]  ;;  %637 = vmatpush.bf16.msrb.mxu1 %v2951_v20  ;;  %v226_v38 = vld [vmem:[%s3286_s23 + $0x3c] sm:$0xf]  ;;  %v2980_v19 = vld [vmem:[%s4131_s1 + $0x68] sm:$0xff]  ;;  %s4022_s5 = scalar_lea.vmem [#allocation2], %s2534_s30 }
  0x27   : > { %v361_v56 = vrot.slane %v360_v48, 4  ;;  %v403_v57 = vrot.slane %v401_v45, 5  ;;  %v407_v58 = vrot.slane %v405_v49, 4  ;;  %v411_v59 = vshll.u32 %v3319_v42, 16  ;;  %1346 = vmatpush.bf16.msrb.mxu0 %v2967_v21  ;;  %s2440_s12 = sshll.u32 %s4022_s5, 4  ;;  %s2425_s13 = scalar_lea.sflag [#allocation3], %s202_s14  ;;  %s2441_s12 = int_to_ptr.vmem [resolvable:$true] %s2440_s12 }
  0x28   : > { %v462_v60 = vpack.c.b16 %v449_v52, %v448_v51  ;;  %v356_v61 = vsel %vm3314_vm3, %v351_v53, %v355_v34  ;;  %v399_v62 = vrot.slane %v398_v54, 4  ;;  %v248_v0 = vshrl.u32 %v216_v50, 16  ;;  %v3373_v51 = vld [vmem:[%s3286_s23 + $0x40] sm:$0xf] }
  0x29   : > { %v366_v1 = vsel %vm3314_vm3, %v361_v56, %v365_v40  ;;  %v452_v2 = vunpack.c.l.b16 %v356_v61  ;;  %v408_v3 = vor.u32 %v407_v58, %v403_v57  ;;  %v413_v4 = vrot.slane %v411_v59, 5  ;;  %v3379_v56 = vld [vmem:[%s3286_s23 + $0x44] sm:$0x1]  ;;  %v230_v58 = vld [vmem:[%s3286_s23 + $0x54] sm:$0xf] }
  0x2a   : > { %2553 = vmatmul.msk.bf16.vlgmr.msra.gmra.mxu1 %vm480_vm2, %v462_v60  ;;  %v453_v6 = vunpack.c.l.b16 %v366_v1  ;;  %v404_v9 = vsel %vm3314_vm3, %v399_v62, %v403_v57  ;;  %v250_v10 = vrot.slane %v248_v0, 4  ;;  %v251_v11 = vshll.u32 %v216_v50, 16 }
  0x2b   : > { %v409_v13 = vrot.slane %v408_v3, 4  ;;  %v456_v14 = vunpack.c.l.b16 %v404_v9  ;;  %v257_v17 = vshll.u32 %v3335_v63, 16  ;;  %v261_v18 = vshrl.u32 %v3335_v63, 16 }
  0x2c   : > { %v464_v22 = vpack.c.b16 %v453_v6, %v452_v2  ;;  %v253_v23 = vrot.slane %v251_v11, 5  ;;  %v267_v24 = vshll.u32 %v3340_v5, 16  ;;  %v711_v25 = vrot.slane %v3340_v5, 5  ;;  %v2708_v5 = vld [vmem:[%s3286_s23 + $0x18] sm:$0xf] }
  0x2d   : > { %v414_v27 = vsel %vm3314_vm3, %v409_v13, %v413_v4  ;;  %v259_v28 = vrot.slane %v257_v17, 5  ;;  %v263_v29 = vrot.slane %v261_v18, 4  ;;  %v320_v33 = vshrl.u32 %v222_v12, 16  ;;  %v3390_v17 = vld [vmem:[%s3286_s23 + $0x58] sm:$0xf] }
  0x2e   : > { %2555 = vmatmul.msk.bf16.vlgmr.msra.gmra.mxu2 %vm480_vm2, %v464_v22  ;;  %v457_v34 = vunpack.c.l.b16 %v414_v27  ;;  %v254_v35 = vor.u32 %v253_v23, %v250_v10  ;;  %v269_v36 = vrot.slane %v267_v24, 5  ;;  %v323_v37 = vshll.u32 %v222_v12, 16  ;;  %v3393_v18 = vld [vmem:[%s3286_s23 + $0x5c] sm:$0x1]  ;;  %v218_v24 = vld [vmem:[%s3286_s23 + $0xc] sm:$0xf] }
  0x2f   : > { %v264_v39 = vor.u32 %v263_v29, %v259_v28  ;;  %v322_v40 = vrot.slane %v320_v33, 4  ;;  %v329_v41 = vshll.u32 %v3360_v26, 16  ;;  %v333_v43 = vshrl.u32 %v3360_v26, 16  ;;  %1729 = vmatpush.bf16.msra.mxu2 %v2980_v19  ;;  %v3433_v19 = vld [vmem:[%s3286_s23 + $0x10] sm:$0xf] }
  0x30   : > { %v466_v44 = vpack.c.b16 %v457_v34, %v456_v14  ;;  %v255_v45 = vrot.slane %v254_v35, 4  ;;  %v325_v46 = vrot.slane %v323_v37, 5  ;;  %v339_v47 = vshll.u32 %v3365_v30, 16 }
  0x31   : > { %v265_v48 = vrot.slane %v264_v39, 4  ;;  %v331_v49 = vrot.slane %v329_v41, 5  ;;  %v335_v50 = vrot.slane %v333_v43, 4  ;;  %v368_v52 = vshrl.u32 %v226_v38, 16 }
  0x32   : > { %2557 = vmatmul.msk.bf16.vlgmr.msra.gmra.mxu3 %vm480_vm2, %v466_v44  ;;  %v260_v53 = vsel %vm3314_vm3, %v255_v45, %v259_v28  ;;  %v326_v54 = vor.u32 %v325_v46, %v322_v40  ;;  %v341_v55 = vrot.slane %v339_v47, 5  ;;  %v371_v57 = vshll.u32 %v226_v38, 16  ;;  %v3406_v38 = vld [vmem:[%s3286_s23 + $0x10] sm:$0xf]  ;;  %v2982_v44 = vld [vmem:[%s4131_s1 + $0x78] sm:$0xff]  ;;  %v2984_v46 = vld [vmem:[%s4131_s1 + $0x88] sm:$0xff] }
  0x33   : > { %v270_v59 = vsel %vm3314_vm3, %v265_v48, %v269_v36  ;;  %v444_v60 = vunpack.c.l.b16 %v260_v53  ;;  %v336_v61 = vor.u32 %v335_v50, %v331_v49  ;;  %v370_v62 = vrot.slane %v368_v52, 4  ;;  %v2970_v45 = vld [vmem:[%s4131_s1 + $0x58] sm:$0xff]  ;;  %v3420_v52 = vld [vmem:[%s3286_s23 + $0x14] sm:$0x1]  ;;  %2075 = vmatpush.bf16.msra.mxu3 %v2982_v44 }
  0x34   : > { %v445_v0 = vunpack.c.l.b16 %v270_v59  ;;  %v327_v1 = vrot.slane %v326_v54, 4  ;;  %v373_v2 = vrot.slane %v371_v57, 5  ;;  %v377_v3 = vshll.u32 %v3373_v51, 16  ;;  %1563 = vmatpush.bf16.msra.mxu1 %v2970_v45 }
  0x35   : > { %v337_v4 = vrot.slane %v336_v61, 4  ;;  %v381_v6 = vshrl.u32 %v3373_v51, 16  ;;  %v387_v9 = vshll.u32 %v3379_v56, 16  ;;  %v416_v10 = vshrl.u32 %v230_v58, 16 }
  0x36   : > { %v460_v11 = vpack.c.b16 %v445_v0, %v444_v60  ;;  %v332_v12 = vsel %vm3314_vm3, %v327_v1, %v331_v49  ;;  %v374_v13 = vor.u32 %v373_v2, %v370_v62  ;;  %v379_v14 = vrot.slane %v377_v3, 5 }
  0x37   : > { %v342_v20 = vsel %vm3314_vm3, %v337_v4, %v341_v55  ;;  %v450_v21 = vunpack.c.l.b16 %v332_v12  ;;  %v383_v22 = vrot.slane %v381_v6, 4  ;;  %v389_v23 = vrot.slane %v387_v9, 5  ;;  %v679_v9 = vld [vmem:[%s3286_s23] sm:$0xe] }
  0x38   : > { %2551 = vmatmul.msk.bf16.vlgmr.msra.gmra.mxu0 %vm480_vm2, %v460_v11  ;;  %v451_v27 = vunpack.c.l.b16 %v342_v20  ;;  %v375_v28 = vrot.slane %v374_v13, 4  ;;  %v418_v29 = vrot.slane %v416_v10, 4  ;;  %v419_v33 = vshll.u32 %v230_v58, 16 }
  0x39   : > { %v384_v34 = vor.u32 %v383_v22, %v379_v14  ;;  %v425_v35 = vshll.u32 %v3390_v17, 16  ;;  %v429_v36 = vshrl.u32 %v3390_v17, 16  ;;  %v435_v37 = vshll.u32 %v3393_v18, 16  ;;  %2293 = vmatpush.bf16.msra.mxu0 %v2984_v46 }
  0x3a   : > { %v463_v39 = vpack.c.b16 %v451_v27, %v450_v21  ;;  %v380_v40 = vsel %vm3314_vm3, %v375_v28, %v379_v14  ;;  %v421_v41 = vrot.slane %v419_v33, 5  ;;  %v272_v43 = vshrl.u32 %v218_v24, 16  ;;  %v2705_v14 = vld [vmem:[%s3286_s23 + $0xc] sm:$0xf] }
  0x3b   : > { %v385_v47 = vrot.slane %v384_v34, 4  ;;  %v454_v48 = vunpack.c.l.b16 %v380_v40  ;;  %v427_v49 = vrot.slane %v425_v35, 5  ;;  %v431_v50 = vrot.slane %v429_v36, 4 }
  0x3c   : > { %2554 = vmatmul.msk.bf16.gmra.mxu1 %vm480_vm2, %v463_v39  ;;  %v422_v53 = vor.u32 %v421_v41, %v418_v29  ;;  %v437_v54 = vrot.slane %v435_v37, 5  ;;  %v274_v55 = vrot.slane %v272_v43, 4  ;;  %v275_v57 = vshll.u32 %v218_v24, 16  ;;  %v3448_v41 = vld [vmem:[%s3286_s23 + $0x14] sm:$0x1] }
  0x3d   : > { %v390_v58 = vsel %vm3314_vm3, %v385_v47, %v389_v23  ;;  %v432_v59 = vor.u32 %v431_v50, %v427_v49  ;;  %v281_v60 = vshll.u32 %v3406_v38, 16  ;;  %v285_v61 = vshrl.u32 %v3406_v38, 16 }
  0x3e   : > { %v455_v62 = vunpack.c.l.b16 %v390_v58  ;;  %v423_v0 = vrot.slane %v422_v53, 4  ;;  %v277_v1 = vrot.slane %v275_v57, 5  ;;  %v291_v2 = vshll.u32 %v3420_v52, 16 }
  0x3f   : > { %v433_v3 = vrot.slane %v432_v59, 4  ;;  %v283_v4 = vrot.slane %v281_v60, 5  ;;  %v287_v6 = vrot.slane %v285_v61, 4  ;;  %v2607_v27 = vrot.slane %v679_v9, 9 }
  0x40   : > { %v465_v10 = vpack.c.b16 %v455_v62, %v454_v48  ;;  %v428_v11 = vsel %vm3314_vm3, %v423_v0, %v427_v49  ;;  %v278_v12 = vor.u32 %v277_v1, %v274_v55  ;;  %v293_v13 = vrot.slane %v291_v2, 5  ;;  %v2943_v55 = vld [vmem:[%s3286_s23] sm:$0xff]  ;;  %v681_v1 = vld [vmem:[%s3286_s23 + $0x18] sm:$0xe] }
  0x41   : > { %v438_v20 = vsel %vm3314_vm3, %v433_v3, %v437_v54  ;;  %v458_v21 = vunpack.c.l.b16 %v428_v11  ;;  %v288_v22 = vor.u32 %v287_v6, %v283_v4  ;;  %v708_v28 = vrot.slane %v3335_v63, 5  ;;  %v680_v3 = vld [vmem:[%s3286_s23 + $0xc] sm:$0xe] }
  0x42   : > { %2556 = vmatmul.msk.bf16.gmra.mxu2 %vm480_vm2, %v465_v10  ;;  %v459_v23 = vunpack.c.l.b16 %v438_v20  ;;  %v279_v24 = vrot.slane %v278_v12, 4  ;;  %v1083_v34 = vshrl.u32 %v2705_v14, 16  ;;  %v1086_v35 = vshll.u32 %v2705_v14, 16 }
  0x43   : > { %v289_v29 = vrot.slane %v288_v22, 4  ;;  %v1092_v36 = vshll.u32 %v3433_v19, 16  ;;  %v710_v40 = vrot.slane %v708_v28, 4  ;;  %v709_v46 = vsel %vm3440_vm6, %v2607_v27, %v708_v28 }
  0x44   : > { %v467_v37 = vpack.c.b16 %v459_v23, %v458_v21  ;;  %v284_v39 = vsel %vm3314_vm3, %v279_v24, %v283_v4  ;;  %v1085_v44 = vrot.slane %v1083_v34, 4  ;;  %v1088_v47 = vrot.slane %v1086_v35, 5  ;;  %v2957_v34 = vld [vmem:[%s3286_s23 + $0xc] sm:$0xff] }
  0x45   : > { %v294_v63 = vsel %vm3314_vm3, %v289_v29, %v293_v13  ;;  %v446_v43 = vunpack.c.l.b16 %v284_v39  ;;  %v712_v48 = vsel %vm3440_vm6, %v710_v40, %v711_v25  ;;  %v1094_v49 = vrot.slane %v1092_v36, 5  ;;  %v3465_v25 = vld [vmem:[%s3286_s23 + $0x1c] sm:$0xf] }
  0x46   : > { %2558 = vmatmul.msk.bf16.gmra.mxu3 %vm480_vm2, %v467_v37  ;;  %v447_v45 = vunpack.c.l.b16 %v294_v63  ;;  %v1096_v50 = vshrl.u32 %v3433_v19, 16  ;;  %v1102_v53 = vshll.u32 %v3448_v41, 16  ;;  %v1089_v57 = vor.u32 %v1088_v47, %v1085_v44 }
  0x47   : > { %v767_v59 = vunpack.c.l.b16 %v709_v46  ;;  %v768_v60 = vunpack.c.l.b16 %v712_v48  ;;  %v715_v4 = vrot.slane %v3406_v38, 5  ;;  %v1107_v6 = vshrl.u32 %v2708_v5, 16 }
  0x48   : > { %v461_v54 = vpack.c.b16 %v447_v45, %v446_v43  ;;  %v1098_v58 = vrot.slane %v1096_v50, 4  ;;  %v1090_v61 = vrot.slane %v1089_v57, 4  ;;  %v1104_v0 = vrot.slane %v1102_v53, 5  ;;  %v2944_v50 = vld [vmem:[%s3286_s23 + $0xc] sm:$0xff] }
  0x49   : > { %v783_v9 = vpack.c.b16 %v768_v60, %v767_v59  ;;  %v1110_v10 = vshll.u32 %v2708_v5, 16  ;;  %v1116_v11 = vshll.u32 %v3465_v25, 16  ;;  %v2609_v12 = vrot.slane %v681_v1, 9  ;;  %v2711_v59 = vld [vmem:[%s3286_s23 + $0x24] sm:$0xf] }
  0x4a   : > { %2552 = vmatmul.msk.bf16.gmra.mxu0 %vm480_vm2, %v461_v54  ;;  %v1099_v62 = vor.u32 %v1098_v58, %v1094_v49  ;;  %v1095_v13 = vsel %vm3314_vm3, %v1090_v61, %v1094_v49  ;;  %v1120_v20 = vshrl.u32 %v3465_v25, 16  ;;  %v722_v21 = vrot.slane %v3290_v7, 5  ;;  %v3500_v60 = vld [vmem:[%s3286_s23 + $0x28] sm:$0xf]  ;;  %v682_v5 = vld [vmem:[%s3286_s23 + $0x24] sm:$0xe] }
  0x4b   : > { %v2608_v22 = vrot.slane %v680_v3, 9  ;;  %v718_v38 = vrot.slane %v3420_v52, 5  ;;  %v725_v23 = vrot.slane %v3293_v8, 5  ;;  %v717_v24 = vrot.slane %v715_v4, 4  ;;  %v3487_v8 = vld [vmem:[%s3286_s23 + $0x20] sm:$0x1] }
  0x4c   : > { %2599 = vmatmul.msk.bf16.vlgmr.msrb.gmra.mxu1 %vm480_vm2, %v2943_v55  ;;  %v1100_v2 = vrot.slane %v1099_v62, 4  ;;  %v1109_v27 = vrot.slane %v1107_v6, 4  ;;  %v723_v28 = vsel %vm3440_vm6, %v2609_v12, %v722_v21  ;;  %v724_v29 = vrot.slane %v722_v21, 4 }
  0x4d   : > { %v1279_v35 = vunpack.c.l.b16 %v1095_v13  ;;  %v1112_v37 = vrot.slane %v1110_v10, 5  ;;  %v771_v7 = vunpack.c.l.b16 %v723_v28  ;;  %v1118_v39 = vrot.slane %v1116_v11, 5  ;;  %v3518_v28 = vld [vmem:[%s3286_s23 + $0x2c] sm:$0x1] }
  0x4e   : > { %v1105_v14 = vsel %vm3314_vm3, %v1100_v2, %v1104_v0  ;;  %v1122_v40 = vrot.slane %v1120_v20, 4  ;;  %v726_v52 = vsel %vm3440_vm6, %v724_v29, %v725_v23  ;;  %v716_v43 = vsel %vm3440_vm6, %v2608_v22, %v715_v4 }
  0x4f   : > { %v1280_v36 = vunpack.c.l.b16 %v1105_v14  ;;  %v772_v63 = vunpack.c.l.b16 %v726_v52  ;;  %v719_v45 = vsel %vm3440_vm6, %v717_v24, %v718_v38  ;;  %v1113_v46 = vor.u32 %v1112_v37, %v1109_v27  ;;  %v2958_v14 = vld [vmem:[%s3286_s23 + $0x18] sm:$0xff] }
  0x50   : > { %v1123_v48 = vor.u32 %v1122_v40, %v1118_v39  ;;  %v1126_v49 = vshll.u32 %v3487_v8, 16  ;;  %v769_v53 = vunpack.c.l.b16 %v716_v43  ;;  %v770_v54 = vunpack.c.l.b16 %v719_v45  ;;  %v2945_v37 = vld [vmem:[%s3286_s23 + $0x18] sm:$0xff] }
  0x51   : > { %v1295_v44 = vpack.c.b16 %v1280_v36, %v1279_v35  ;;  %v785_v47 = vpack.c.b16 %v772_v63, %v771_v7  ;;  %v1114_v55 = vrot.slane %v1113_v46, 4  ;;  %v729_v61 = vrot.slane %v3360_v26, 5  ;;  %v2714_v7 = vld [vmem:[%s3286_s23 + $0x30] sm:$0xf] }
  0x52   : > { %2627 = vmatmul.msk.bf16.vlgmr.msrb.gmra.mxu2 %vm480_vm2, %v783_v9  ;;  %v1124_v57 = vrot.slane %v1123_v48, 4  ;;  %v1128_v58 = vrot.slane %v1126_v49, 5  ;;  %v732_v62 = vrot.slane %v3365_v30, 5  ;;  %v784_v0 = vpack.c.b16 %v770_v54, %v769_v53 }
  0x53   : > { %v2610_v1 = vrot.slane %v682_v5, 9  ;;  %v1119_v2 = vsel %vm3314_vm3, %v1114_v55, %v1118_v39  ;;  %v1131_v3 = vshrl.u32 %v2711_v59, 16  ;;  %v1134_v4 = vshll.u32 %v2711_v59, 16  ;;  %v3526_v39 = vld [vmem:[%s3286_s23 + $0x34] sm:$0xf] }
  0x54   : > { %v731_v6 = vrot.slane %v729_v61, 4  ;;  %v1129_v9 = vsel %vm3314_vm3, %v1124_v57, %v1128_v58  ;;  %v1140_v10 = vshll.u32 %v3500_v60, 16  ;;  %v1144_v11 = vshrl.u32 %v3500_v60, 16  ;;  %v2959_v57 = vld [vmem:[%s3286_s23 + $0x24] sm:$0xff]  ;;  %v3538_v5 = vld [vmem:[%s3286_s23 + $0x38] sm:$0x1] }
  0x55   : > { %v730_v26 = vsel %vm3440_vm6, %v2610_v1, %v729_v61  ;;  %v1281_v20 = vunpack.c.l.b16 %v1119_v2  ;;  %v1282_v21 = vunpack.c.l.b16 %v1129_v9  ;;  %v1133_v22 = vrot.slane %v1131_v3, 4  ;;  %v2979_v2 = vld [vmem:[%s4131_s1 + $0x60] sm:$0xff]  ;;  %v2981_v9 = vld [vmem:[%s4131_s1 + $0x70] sm:$0xff] }
  0x56   : > { %2697 = vmatmul.msk.bf16.vlgmr.msrb.gmra.mxu3 %vm480_vm2, %v2957_v34  ;;  %v733_v30 = vsel %vm3440_vm6, %v731_v6, %v732_v62  ;;  %v773_v12 = vunpack.c.l.b16 %v730_v26  ;;  %v1136_v38 = vrot.slane %v1134_v4, 5  ;;  %v1142_v23 = vrot.slane %v1140_v10, 5  ;;  %v2946_v3 = vld [vmem:[%s3286_s23 + $0x24] sm:$0xff]  ;;  %1730 = vmatpush.bf16.msra.mxu2 %v2979_v2  ;;  %v2969_v10 = vld [vmem:[%s4131_s1 + $0x50] sm:$0xff]  ;;  %v2717_v26 = vld [vmem:[%s3286_s23 + $0x3c] sm:$0xf] }
  0x57   : > { %v774_v13 = vunpack.c.l.b16 %v733_v30  ;;  %v1146_v24 = vrot.slane %v1144_v11, 4  ;;  %v1296_v29 = vpack.c.b16 %v1282_v21, %v1281_v20  ;;  %v1150_v36 = vshll.u32 %v3518_v28, 16  ;;  %v2983_v11 = vld [vmem:[%s4131_s1 + $0x80] sm:$0xff]  ;;  %2076 = vmatpush.bf16.msra.mxu3 %v2981_v9  ;;  %1564 = vmatpush.bf16.msra.mxu1 %v2969_v10 }
  0x58   : > { %v1137_v34 = vor.u32 %v1136_v38, %v1133_v22  ;;  %v1155_v43 = vshrl.u32 %v2714_v7, 16  ;;  %v1164_v45 = vshll.u32 %v3526_v39, 16  ;;  %v1168_v46 = vshrl.u32 %v3526_v39, 16  ;;  %v3558_v30 = vld [vmem:[%s3286_s23 + $0x40] sm:$0xf]  ;;  %2294 = vmatpush.bf16.msra.mxu0 %v2983_v11 }
  0x59   : > { %v786_v27 = vpack.c.b16 %v774_v13, %v773_v12  ;;  %v1147_v35 = vor.u32 %v1146_v24, %v1142_v23  ;;  %v1152_v63 = vrot.slane %v1150_v36, 5  ;;  %v1179_v20 = vshrl.u32 %v2717_v26, 16  ;;  %v2961_v9 = vld [vmem:[%s3286_s23 + $0x3c] sm:$0xff] }
  0x5a   : > { %2741 = vmatmul.msk.bf16.vlgmr.msrb.gmra.mxu0 %vm480_vm2, %v1295_v44  ;;  %v1138_v40 = vrot.slane %v1137_v34, 4  ;;  %v1158_v44 = vshll.u32 %v2714_v7, 16  ;;  %v1166_v54 = vrot.slane %v1164_v45, 5  ;;  %v1170_v55 = vrot.slane %v1168_v46, 4 }
  0x5b   : > { %v1148_v52 = vrot.slane %v1147_v35, 4  ;;  %v1182_v21 = vshll.u32 %v2717_v26, 16  ;;  %v1188_v22 = vshll.u32 %v3558_v30, 16  ;;  %v1192_v38 = vshrl.u32 %v3558_v30, 16  ;;  %v2960_v35 = vld [vmem:[%s3286_s23 + $0x30] sm:$0xff] }
  0x5c   : > { %2600 = vmatmul.msk.bf16.gmra.mxu1 %vm480_vm2, %v2944_v50  ;;  %v1143_v48 = vsel %vm3314_vm3, %v1138_v40, %v1142_v23  ;;  %v1157_v50 = vrot.slane %v1155_v43, 4  ;;  %v1160_v53 = vrot.slane %v1158_v44, 5  ;;  %v1171_v62 = vor.u32 %v1170_v55, %v1166_v54  ;;  %v3573_v43 = vld [vmem:[%s3286_s23 + $0x44] sm:$0x1] }
  0x5d   : > { %v1153_v49 = vsel %vm3314_vm3, %v1148_v52, %v1152_v63  ;;  %v1283_v58 = vunpack.c.l.b16 %v1143_v48  ;;  %v736_v23 = vrot.slane %v3300_v15, 5  ;;  %v1181_v36 = vrot.slane %v1179_v20, 4 }
  0x5e   : > { %v1284_v59 = vunpack.c.l.b16 %v1153_v49  ;;  %v1161_v61 = vor.u32 %v1160_v53, %v1157_v50  ;;  %v1172_v4 = vrot.slane %v1171_v62, 4  ;;  %v1190_v7 = vrot.slane %v1188_v22, 5  ;;  %v2947_v49 = vld [vmem:[%s3286_s23 + $0x30] sm:$0xff] }
  0x5f   : > { %v1194_v40 = vrot.slane %v1192_v38, 4  ;;  %v738_v52 = vrot.slane %v736_v23, 4  ;;  %v739_v63 = vrot.slane %v3303_v16, 5  ;;  %v1198_v46 = vshll.u32 %v3573_v43, 16 }
  0x60   : > { %v1297_v1 = vpack.c.b16 %v1284_v59, %v1283_v58  ;;  %v3586_v58 = vld [vmem:[%s3286_s23 + $0x4c] sm:$0xf] }
  0x61   : > { %v1195_v45 = vor.u32 %v1194_v40, %v1190_v7  ;;  %v740_v48 = vsel %vm3440_vm6, %v738_v52, %v739_v63  ;;  %v1200_v55 = vrot.slane %v1198_v46, 5  ;;  %v3612_v63 = vld [vmem:[%s3286_s23 + $0x58] sm:$0xf] }
  0x62   : > { %2628 = vmatmul.msk.bf16.gmra.mxu2 %vm480_vm2, %v784_v0  ;;  %v1174_v0 = vshll.u32 %v3538_v5, 16  ;;  %v776_v50 = vunpack.c.l.b16 %v740_v48 }
  0x64   : > { %v1176_v6 = vrot.slane %v1174_v0, 5  ;;  %v743_v0 = vrot.slane %v3373_v51, 5 }
  0x66   : > { %2698 = vmatmul.msk.bf16.gmra.mxu3 %vm480_vm2, %v2958_v14  ;;  %v1177_v13 = vsel %vm3314_vm3, %v1172_v4, %v1176_v6  ;;  %v683_v14 = vld [vmem:[%s3286_s23 + $0x30] sm:$0xe]  ;;  %v1216_v4 = vshrl.u32 %v3586_v58, 16  ;;  %v745_v26 = vrot.slane %v743_v0, 4 }
  0x67   : > { %v2611_v34 = vrot.slane %v683_v14, 9 }
  0x68   : > { %v1218_v20 = vrot.slane %v1216_v4, 4 }
  0x69   : > { %v737_v15 = vsel %vm3440_vm6, %v2611_v34, %v736_v23  ;;  %v2948_v34 = vld [vmem:[%s3286_s23 + $0x3c] sm:$0xff] }
  0x6a   : > { %2742 = vmatmul.msk.bf16.gmra.mxu0 %vm480_vm2, %v1296_v29  ;;  %v1286_v29 = vunpack.c.l.b16 %v1177_v13  ;;  %v775_v16 = vunpack.c.l.b16 %v737_v15 }
  0x6c   : > { %2601 = vmatmul.msk.bf16.gmra.mxu1 %vm480_vm2, %v2945_v37  ;;  %v1184_v37 = vrot.slane %v1182_v21, 5  ;;  %v787_v59 = vpack.c.b16 %v776_v50, %v775_v16  ;;  %v3600_v21 = vld [vmem:[%s3286_s23 + $0x50] sm:$0x1]  ;;  %v1240_v16 = vshrl.u32 %v3612_v63, 16  ;;  %v685_v50 = vld [vmem:[%s3286_s23 + $0x48] sm:$0xe] }
  0x72   : > { %2629 = vmatmul.msk.bf16.gmra.mxu2 %vm480_vm2, %v785_v47  ;;  %v1162_v47 = vrot.slane %v1161_v61, 4 }
  0x74   : > { %v1167_v12 = vsel %vm3314_vm3, %v1162_v47, %v1166_v54  ;;  %v1196_v54 = vrot.slane %v1195_v45, 4  ;;  %v1212_v47 = vshll.u32 %v3586_v58, 16  ;;  %v1236_v45 = vshll.u32 %v3612_v63, 16 }
  0x75   : > { %v1285_v24 = vunpack.c.l.b16 %v1167_v12  ;;  %v746_v12 = vrot.slane %v3379_v56, 5  ;;  %v1222_v56 = vshll.u32 %v3600_v21, 16 }
  0x76   : > { %2699 = vmatmul.msk.bf16.gmra.mxu3 %vm480_vm2, %v2959_v57  ;;  %v2720_v57 = vld [vmem:[%s3286_s23 + $0x48] sm:$0xf]  ;;  %v1201_v62 = vsel %vm3314_vm3, %v1196_v54, %v1200_v55  ;;  %v1214_v14 = vrot.slane %v1212_v47, 5 }
  0x77   : > { %v1298_v44 = vpack.c.b16 %v1286_v29, %v1285_v24  ;;  %v1203_v2 = vshrl.u32 %v2720_v57, 16  ;;  %v1288_v10 = vunpack.c.l.b16 %v1201_v62  ;;  %v747_v23 = vsel %vm3440_vm6, %v745_v26, %v746_v12  ;;  %v2962_v55 = vld [vmem:[%s3286_s23 + $0x48] sm:$0xff] }
  0x78   : > { %v1219_v29 = vor.u32 %v1218_v20, %v1214_v14  ;;  %v1224_v52 = vrot.slane %v1222_v56, 5  ;;  %v2613_v62 = vrot.slane %v685_v50, 9  ;;  %v2726_v20 = vld [vmem:[%s3286_s23 + $0x60] sm:$0xf]  ;;  %v3660_v50 = vld [vmem:[%s3286_s23 + $0x68] sm:$0x1] }
  0x79   : > { %v1205_v13 = vrot.slane %v1203_v2, 4  ;;  %v1242_v2 = vrot.slane %v1240_v16, 4 }
  0x7a   : > { %2743 = vmatmul.msk.bf16.gmra.mxu0 %vm480_vm2, %v1297_v1  ;;  %v684_v1 = vld [vmem:[%s3286_s23 + $0x3c] sm:$0xe]  ;;  %v1220_v40 = vrot.slane %v1219_v29, 4  ;;  %v1254_v29 = vshll.u32 %v2726_v20, 16 }
  0x7b   : > { %v2612_v11 = vrot.slane %v684_v1, 9  ;;  %v753_v1 = vrot.slane %v3319_v42, 5 }
  0x7c   : > { %2602 = vmatmul.msk.bf16.gmra.mxu1 %vm480_vm2, %v2946_v3  ;;  %v1206_v3 = vshll.u32 %v2720_v57, 16  ;;  %v1225_v48 = vsel %vm3314_vm3, %v1220_v40, %v1224_v52 }
  0x7d   : > { %v744_v38 = vsel %vm3440_vm6, %v2612_v11, %v743_v0  ;;  %v2949_v11 = vld [vmem:[%s3286_s23 + $0x48] sm:$0xff] }
  0x7e   : > { %v1208_v51 = vrot.slane %v1206_v3, 5  ;;  %v3627_v3 = vld [vmem:[%s3286_s23 + $0x5c] sm:$0x1] }
  0x7f   : > { %v1246_v42 = vshll.u32 %v3627_v3, 16 }
  0x80   : > { %v1209_v24 = vor.u32 %v1208_v51, %v1205_v13 }
  0x82   : > { %2630 = vmatmul.msk.bf16.gmra.mxu2 %vm480_vm2, %v786_v27  ;;  %v1185_v27 = vor.u32 %v1184_v37, %v1181_v36  ;;  %v778_v36 = vunpack.c.l.b16 %v747_v23  ;;  %v2723_v37 = vld [vmem:[%s3286_s23 + $0x54] sm:$0xf] }
  0x83   : > { %v1230_v15 = vshll.u32 %v2723_v37, 16 }
  0x84   : > { %v1186_v53 = vrot.slane %v1185_v27, 4 }
  0x85   : > { %v1232_v54 = vrot.slane %v1230_v15, 5 }
  0x86   : > { %2700 = vmatmul.msk.bf16.gmra.mxu3 %vm480_vm2, %v2960_v35  ;;  %v1191_v61 = vsel %vm3314_vm3, %v1186_v53, %v1190_v7  ;;  %v777_v35 = vunpack.c.l.b16 %v744_v38  ;;  %v1210_v7 = vrot.slane %v1209_v24, 4  ;;  %v1251_v24 = vshrl.u32 %v2726_v20, 16 }
  0x87   : > { %v1287_v6 = vunpack.c.l.b16 %v1191_v61  ;;  %v1238_v61 = vrot.slane %v1236_v45, 5  ;;  %v1256_v45 = vrot.slane %v1254_v29, 5 }
  0x88   : > { %v788_v27 = vpack.c.b16 %v778_v36, %v777_v35  ;;  %v1215_v46 = vsel %vm3314_vm3, %v1210_v7, %v1214_v14  ;;  %v1248_v14 = vrot.slane %v1246_v42, 5  ;;  %v757_v36 = vrot.slane %v3390_v17, 5  ;;  %v686_v7 = vld [vmem:[%s3286_s23 + $0x54] sm:$0xe] }
  0x89   : > { %v1299_v22 = vpack.c.b16 %v1288_v10, %v1287_v6  ;;  %v1289_v57 = vunpack.c.l.b16 %v1215_v46  ;;  %v1243_v10 = vor.u32 %v1242_v2, %v1238_v61  ;;  %v760_v17 = vrot.slane %v3393_v18, 5  ;;  %v2950_v2 = vld [vmem:[%s3286_s23 + $0x54] sm:$0xff] }
  0x8a   : > { %2744 = vmatmul.msk.bf16.gmra.mxu0 %vm480_vm2, %v1298_v44  ;;  %v1227_v44 = vshrl.u32 %v2723_v37, 16 }
  0x8b   : > { %v1244_v51 = vrot.slane %v1243_v10, 4 }
  0x8c   : > { %2603 = vmatmul.msk.bf16.gmra.mxu1 %vm480_vm2, %v2947_v49  ;;  %v750_v49 = vrot.slane %v3310_v31, 5  ;;  %v1229_v53 = vrot.slane %v1227_v44, 4  ;;  %v2963_v44 = vld [vmem:[%s3286_s23 + $0x54] sm:$0xff] }
  0x8e   : > { %v752_v0 = vrot.slane %v750_v49, 4  ;;  %v1233_v31 = vor.u32 %v1232_v54, %v1229_v53  ;;  %v751_v6 = vsel %vm3440_vm6, %v2613_v62, %v750_v49  ;;  %v759_v49 = vrot.slane %v757_v36, 4 }
  0x8f   : > { %v779_v12 = vunpack.c.l.b16 %v751_v6 }
  0x90   : > { %v1234_v26 = vrot.slane %v1233_v31, 4  ;;  %v761_v62 = vsel %vm3440_vm6, %v759_v49, %v760_v17  ;;  %v2964_v49 = vld [vmem:[%s3286_s23 + $0x60] sm:$0xff] }
  0x91   : > { %v782_v42 = vunpack.c.l.b16 %v761_v62 }
  0x92   : > { %2631 = vmatmul.msk.bf16.gmra.mxu2 %vm480_vm2, %v787_v59  ;;  %v1290_v59 = vunpack.c.l.b16 %v1225_v48  ;;  %v1239_v38 = vsel %vm3314_vm3, %v1234_v26, %v1238_v61  ;;  %v2614_v48 = vrot.slane %v686_v7, 9 }
  0x93   : > { %v1291_v40 = vunpack.c.l.b16 %v1239_v38  ;;  %v1441_v38 = vrot.slane %v3448_v41, 5 }
  0x94   : > { %v1300_v47 = vpack.c.b16 %v1290_v59, %v1289_v57  ;;  %v2855_v59 = vld [vmem:[%s3286_s23 + $0x18] sm:$0xf]  ;;  %v758_v61 = vsel %vm3440_vm6, %v2614_v48, %v757_v36 }
  0x95   : > { %v1813_v6 = vshrl.u32 %v2855_v59, 16  ;;  %v781_v10 = vunpack.c.l.b16 %v758_v61 }
  0x96   : > { %2701 = vmatmul.msk.bf16.gmra.mxu3 %vm480_vm2, %v2961_v9  ;;  %v754_v9 = vsel %vm3440_vm6, %v752_v0, %v753_v1  ;;  %v1270_v0 = vshll.u32 %v3660_v50, 16  ;;  %v3674_v1 = vld [vmem:[%s3286_s23 + $0x1c] sm:$0xf] }
  0x97   : > { %v780_v13 = vunpack.c.l.b16 %v754_v9  ;;  %v1816_v9 = vshll.u32 %v2855_v59, 16  ;;  %v1822_v26 = vshll.u32 %v3674_v1, 16  ;;  %v1815_v29 = vrot.slane %v1813_v6, 4 }
  0x98   : > { %v1272_v20 = vrot.slane %v1270_v0, 5  ;;  %v2168_v6 = vrot.slane %v3674_v1, 5 }
  0x99   : > { %v789_v23 = vpack.c.b16 %v780_v13, %v779_v12  ;;  %v1826_v12 = vshrl.u32 %v3674_v1, 16  ;;  %v1824_v36 = vrot.slane %v1822_v26, 5 }
  0x9a   : > { %2745 = vmatmul.msk.bf16.gmra.mxu0 %vm480_vm2, %v1299_v22  ;;  %v3641_v22 = vld [vmem:[%s3286_s23 + $0x64] sm:$0xf] }
  0x9b   : > { %v1260_v56 = vshll.u32 %v3641_v22, 16  ;;  %v1264_v37 = vshrl.u32 %v3641_v22, 16 }
  0x9c   : > { %2604 = vmatmul.msk.bf16.gmra.mxu1 %vm480_vm2, %v2948_v34  ;;  %v1249_v34 = vsel %vm3314_vm3, %v1244_v51, %v1248_v14 }
  0x9d   : > { %v1292_v15 = vunpack.c.l.b16 %v1249_v34  ;;  %v1262_v46 = vrot.slane %v1260_v56, 5  ;;  %v1266_v16 = vrot.slane %v1264_v37, 4  ;;  %v1818_v56 = vrot.slane %v1816_v9, 5 }
  0x9e   : > { %v790_v34 = vpack.c.b16 %v782_v42, %v781_v10  ;;  %v1828_v37 = vrot.slane %v1826_v12, 4  ;;  %v2858_v42 = vld [vmem:[%s3286_s23 + $0x24] sm:$0xf] }
  0x9f   : > { %v1267_v18 = vor.u32 %v1266_v16, %v1262_v46  ;;  %v1819_v48 = vor.u32 %v1818_v56, %v1815_v29  ;;  %v2750_v29 = vld [vmem:[%s3286_s23 + $0x18] sm:$0xe]  ;;  %v1837_v56 = vshrl.u32 %v2858_v42, 16 }
  0xa0   : > { %v1829_v16 = vor.u32 %v1828_v37, %v1824_v36 }
  0xa1   : > { %v1268_v14 = vrot.slane %v1267_v18, 4  ;;  %v1820_v62 = vrot.slane %v1819_v48, 4 }
  0xa2   : > { %2632 = vmatmul.msk.bf16.gmra.mxu2 %vm480_vm2, %v788_v27  ;;  %v1253_v27 = vrot.slane %v1251_v24, 4  ;;  %v1830_v0 = vrot.slane %v1829_v16, 4 }
  0xa3   : > { %v1273_v41 = vsel %vm3314_vm3, %v1268_v14, %v1272_v20  ;;  %v1445_v20 = vrot.slane %v3465_v25, 5 }
  0xa4   : > { %v1257_v57 = vor.u32 %v1256_v45, %v1253_v27 }
  0xa6   : > { %2702 = vmatmul.msk.bf16.gmra.mxu3 %vm480_vm2, %v2962_v55  ;;  %v1301_v55 = vpack.c.b16 %v1292_v15, %v1291_v40  ;;  %v1258_v51 = vrot.slane %v1257_v57, 4 }
  0xa7   : > { %v3630_v4 = vpop.f32.mrf.mxu1 }
  0xa8   : > { %v1263_v40 = vsel %vm3314_vm3, %v1258_v51, %v1262_v46  ;;  %v1294_v46 = vunpack.c.l.b16 %v1273_v41  ;;  %v1825_v51 = vsel %vm3314_vm3, %v1820_v62, %v1824_v36  ;;  %v1447_v41 = vrot.slane %v1445_v20, 4 }
  0xa9   : > { %v1293_v17 = vunpack.c.l.b16 %v1263_v40  ;;  %v2758_v40 = vrot.slane %v2750_v29, 9 }
  0xaa   : > { %2746 = vmatmul.msk.bf16.gmra.mxu0 %vm480_vm2, %v1300_v47  ;;  %v1438_v47 = vrot.slane %v3433_v19, 5 }
  0xab   : > { %v1302_v18 = vpack.c.b16 %v1294_v46, %v1293_v17  ;;  %v1839_v46 = vrot.slane %v1837_v56, 4 }
  0xac   : > { %2605 = vmatmul.msk.bf16.gmra.mxu1 %vm480_vm2, %v2949_v11  ;;  %v2749_v11 = vld [vmem:[%s3286_s23 + $0xc] sm:$0xe]  ;;  %v1440_v24 = vrot.slane %v1438_v47, 4 }
  0xae   : > { %v1442_v45 = vsel %vm3440_vm6, %v1440_v24, %v1441_v38 }
  0xaf   : > { %v3649_v35 = vpop.f32.mrf.mxu1  ;;  %v1498_v59 = vunpack.c.l.b16 %v1442_v45  ;;  %v2009_v45 = vunpack.c.l.b16 %v1825_v51 }
  0xb1   : > { %v3654_v52 = vpop.f32.mrf.mxu2 }
  0xb2   : > { %2633 = vmatmul.msk.bf16.gmra.mxu2 %vm480_vm2, %v789_v23  ;;  %v2757_v23 = vrot.slane %v2749_v11, 9  ;;  %v3714_v11 = vld [vmem:[%s3286_s23 + $0x28] sm:$0xf] }
  0xb3   : > { %v1846_v37 = vshll.u32 %v3714_v11, 16  ;;  %v1850_v36 = vshrl.u32 %v3714_v11, 16 }
  0xb4   : > { %v1439_v27 = vsel %vm3440_vm6, %v2757_v23, %v1438_v47  ;;  %v2899_v47 = vld [vmem:[%s3286_s23 + $0x18] sm:$0xe]  ;;  %v2170_v23 = vrot.slane %v2168_v6, 4 }
  0xb5   : > { %v3662_v53 = vpop.f32.mrf.mxu0  ;;  %v3664_v54 = vpop.f32.mrf.mxu3  ;;  %v1497_v57 = vunpack.c.l.b16 %v1439_v27  ;;  %v2907_v14 = vrot.slane %v2899_v47, 9  ;;  %v2971_v27 = vld [vmem:[%s3286_s23 + $0x18] sm:$0xff] }
  0xb6   : > { %2703 = vmatmul.msk.bf16.gmra.mxu3 %vm480_vm2, %v2963_v44  ;;  %v2857_v44 = vld [vmem:[%s3286_s23 + $0x20] sm:$0x1] }
  0xb7   : > { %v1513_v10 = vpack.c.b16 %v1498_v59, %v1497_v57  ;;  %v2171_v24 = vrot.slane %v2857_v44, 5  ;;  %v1852_v57 = vrot.slane %v1850_v36, 4  ;;  %v3740_v59 = vld [vmem:[%s3286_s23 + $0x2c] sm:$0x1] }
  0xb8   : > { %v1856_v51 = vshll.u32 %v3740_v59, 16 }
  0xb9   : > { %v3677_v31 = vpop.f32.mrf.mxu1  ;;  %v3684_v13 = vpop.f32.mrf.mxu2 }
  0xba   : > { %2747 = vmatmul.msk.bf16.gmra.mxu0 %vm480_vm2, %v1301_v55  ;;  %v1832_v55 = vshll.u32 %v2857_v44, 16  ;;  %v2169_v44 = vsel %vm3440_vm6, %v2907_v14, %v2168_v6 }
  0xbb   : > { %v2227_v47 = vunpack.c.l.b16 %v2169_v44 }
  0xbc   : > { %2606 = vmatmul.msk.bf16.gmra.mxu1 %vm480_vm2, %v2950_v2  ;;  %v1834_v2 = vrot.slane %v1832_v55, 5  ;;  %v1848_v55 = vrot.slane %v1846_v37, 5 }
  0xbd   : > { %v3688_v19 = vpop.f32.mrf.mxu0  ;;  %v3690_v7 = vpop.f32.mrf.mxu3 }
  0xbe   : > { %v1835_v38 = vsel %vm3314_vm3, %v1830_v0, %v1834_v2 }
  0xbf   : > { %v2010_v48 = vunpack.c.l.b16 %v1835_v38 }
  0xc1   : > { %v3697_v15 = vpop.f32.mrf.mxu1  ;;  %v2025_v2 = vpack.c.b16 %v2010_v48, %v2009_v45 }
  0xc2   : > { %2634 = vmatmul.msk.bf16.gmra.mxu2 %vm480_vm2, %v790_v34  ;;  %v1840_v34 = vshll.u32 %v2858_v42, 16 }
  0xc4   : > { %v1842_v16 = vrot.slane %v1840_v34, 5  ;;  %v3755_v34 = vld [vmem:[%s3286_s23 + $0x34] sm:$0xf] }
  0xc5   : > { %v3705_v61 = vpop.f32.mrf.mxu2 }
  0xc6   : > { %2704 = vmatmul.msk.bf16.gmra.mxu3 %vm480_vm2, %v2964_v49  ;;  %v2172_v49 = vsel %vm3440_vm6, %v2170_v23, %v2171_v24  ;;  %v1843_v42 = vor.u32 %v1842_v16, %v1839_v46  ;;  %v2900_v24 = vld [vmem:[%s3286_s23 + $0x24] sm:$0xe]  ;;  %v1452_v46 = vrot.slane %v3500_v60, 5  ;;  %v1870_v16 = vshll.u32 %v3755_v34, 16 }
  0xc7   : > { %v3710_v9 = vpop.f32.mrf.mxu0  ;;  %v2228_v6 = vunpack.c.l.b16 %v2172_v49 }
  0xc8   : > { %v1844_v36 = vrot.slane %v1843_v42, 4 }
  0xc9   : > { %v3716_v26 = vpop.f32.mrf.mxu3  ;;  %v639_v12 = vpop.f32.mrf.mxu1  ;;  %v2243_v29 = vpack.c.b16 %v2228_v6, %v2227_v47  ;;  %v2178_v47 = vrot.slane %v3740_v59, 5 }
  0xca   : > { %2748 = vmatmul.msk.bf16.gmra.mxu0 %vm480_vm2, %v1302_v18  ;;  %v640_v1 = vadd.f32 %v639_v12, %v3662_v53  ;;  %v1448_v53 = vrot.slane %v3487_v8, 5  ;;  %v1446_v18 = vsel %vm3440_vm6, %v2758_v40, %v1445_v20  ;;  %v1853_v12 = vor.u32 %v1852_v57, %v1848_v55  ;;  %v2861_v20 = vld [vmem:[%s3286_s23 + $0x30] sm:$0xf] }
  0xcb   : > { %v1499_v14 = vunpack.c.l.b16 %v1446_v18  ;;  %v1861_v45 = vshrl.u32 %v2861_v20, 16  ;;  %v1864_v48 = vshll.u32 %v2861_v20, 16  ;;  %v1455_v57 = vrot.slane %v3518_v28, 5 }
  0xcc   : > { %2777 = vmatmul.msk.bf16.vlgmr.msra.gmra.mxu1 %vm480_vm2, %v1513_v10  ;;  %v1449_v0 = vsel %vm3440_vm6, %v1447_v41, %v1448_v53  ;;  %v1854_v40 = vrot.slane %v1853_v12, 4  ;;  %v2175_v41 = vrot.slane %v3714_v11, 5  ;;  %v2751_v11 = vld [vmem:[%s3286_s23 + $0x24] sm:$0xe] }
  0xcd   : > { %v3729_v25 = vpop.f32.mrf.mxu2  ;;  %v1500_v38 = vunpack.c.l.b16 %v1449_v0  ;;  %v1849_v0 = vsel %vm3314_vm3, %v1844_v36, %v1848_v55  ;;  %v1863_v6 = vrot.slane %v1861_v45, 4  ;;  %v1866_v42 = vrot.slane %v1864_v48, 5 }
  0xce   : > { %v2177_v60 = vrot.slane %v2175_v41, 4  ;;  %v1872_v55 = vrot.slane %v1870_v16, 5  ;;  %v2011_v20 = vunpack.c.l.b16 %v1849_v0 }
  0xcf   : > { %v3737_v17 = vpop.f32.mrf.mxu0  ;;  %v1514_v53 = vpack.c.b16 %v1500_v38, %v1499_v14  ;;  %v1454_v14 = vrot.slane %v1452_v46, 4 }
  0xd0   : > { %v2179_v36 = vsel %vm3440_vm6, %v2177_v60, %v2178_v47  ;;  %v2901_v47 = vld [vmem:[%s3286_s23 + $0x30] sm:$0xe] }
  0xd1   : > { %v3742_v62 = vpop.f32.mrf.mxu3  ;;  %v641_v8 = vpop.f32.mrf.mxu1 }
  0xd2   : > { %2847 = vmatmul.msk.bf16.vlgmr.msra.gmra.mxu2 %vm480_vm2, %v2971_v27  ;;  %v642_v10 = vadd.f32 %v641_v8, %v3688_v19  ;;  %v1858_v19 = vrot.slane %v1856_v51, 5  ;;  %v2908_v27 = vrot.slane %v2900_v24, 9  ;;  %v2759_v51 = vrot.slane %v2751_v11, 9  ;;  %v2972_v24 = vld [vmem:[%s3286_s23 + $0x24] sm:$0xff] }
  0xd4   : > { %v2176_v28 = vsel %vm3440_vm6, %v2908_v27, %v2175_v41  ;;  %v1456_v27 = vsel %vm3440_vm6, %v1454_v14, %v1455_v57 }
  0xd5   : > { %v836_v23 = vpop.f32.mrf.mxu2 }
  0xd6   : > { %2891 = vmatmul.msk.bf16.vlgmr.msra.gmra.mxu3 %vm480_vm2, %v2025_v2  ;;  %v876_v56 = vadd.f32 %v836_v23, %v640_v1  ;;  %v1874_v1 = vshrl.u32 %v3755_v34, 16  ;;  %v1859_v2 = vsel %vm3314_vm3, %v1854_v40, %v1858_v19  ;;  %v2229_v40 = vunpack.c.l.b16 %v2176_v28 }
  0xd7   : > { %v1348_v37 = vpop.f32.mrf.mxu0  ;;  %v1867_v19 = vor.u32 %v1866_v42, %v1863_v6  ;;  %v2182_v42 = vrot.slane %v3755_v34, 5 }
  0xd8   : > { %v1876_v38 = vrot.slane %v1874_v1, 4 }
  0xd9   : > { %v1002_v44 = vpop.f32.mrf.mxu3  ;;  %v644_v49 = vpop.f32.mrf.mxu1 }
  0xda   : > { %2927 = vmatmul.msk.bf16.vlgmr.msra.gmra.mxu0 %vm480_vm2, %v2243_v29  ;;  %v1042_v8 = vadd.f32 %v1002_v44, %v876_v56  ;;  %v645_v18 = vadd.f32 %v644_v49, %v3710_v9  ;;  %v2012_v29 = vunpack.c.l.b16 %v1859_v2  ;;  %v3777_v56 = vld [vmem:[%s3286_s23 + $0x38] sm:$0x1]  ;;  %v2230_v49 = vunpack.c.l.b16 %v2179_v36 }
  0xdb   : > { %v1880_v45 = vshll.u32 %v3777_v56, 16 }
  0xdc   : > { %2778 = vmatmul.msk.bf16.gmra.mxu1 %vm480_vm2, %v1514_v53  ;;  %v3773_v9 = vadd.f32 %v1348_v37, %v1042_v8  ;;  %v1453_v53 = vsel %vm3440_vm6, %v2759_v51, %v1452_v46  ;;  %v2026_v44 = vpack.c.b16 %v2012_v29, %v2011_v20  ;;  %v1502_v8 = vunpack.c.l.b16 %v1456_v27  ;;  %v3795_v51 = vld [vmem:[%s3286_s23 + $0x40] sm:$0xf] }
  0xdd   : > { %v838_v12 = vpop.f32.mrf.mxu2  ;;  %v1501_v1 = vunpack.c.l.b16 %v1453_v53  ;;  %v1868_v46 = vrot.slane %v1867_v19, 4  ;;  %v1882_v2 = vrot.slane %v1880_v45, 5  ;;  %v2244_v57 = vpack.c.b16 %v2230_v49, %v2229_v40  ;;  %v2973_v49 = vld [vmem:[%s3286_s23 + $0x30] sm:$0xff] }
  0xde   : > { %v877_v23 = vadd.f32 %v838_v12, %v642_v10  ;;  %v1877_v10 = vor.u32 %v1876_v38, %v1872_v55  ;;  %v2864_v12 = vld [vmem:[%s3286_s23 + $0x3c] sm:$0xf]  ;;  %v1459_v20 = vrot.slane %v3526_v39, 5  ;;  %v2184_v19 = vrot.slane %v2182_v42, 4 }
  0xdf   : > { %v1350_v59 = vpop.f32.mrf.mxu0  ;;  %v1885_v36 = vshrl.u32 %v2864_v12, 16  ;;  %v1888_v40 = vshll.u32 %v2864_v12, 16  ;;  %v1462_v53 = vrot.slane %v3538_v5, 5 }
  0xe0   : > { %v1878_v0 = vrot.slane %v1877_v10, 4 }
  0xe1   : > { %v1004_v41 = vpop.f32.mrf.mxu3  ;;  %v646_v37 = vpop.f32.mrf.mxu1 }
  0xe2   : > { %v1043_v48 = vadd.f32 %v1004_v41, %v877_v23  ;;  %2848 = vmatmul.msk.bf16.gmra.mxu2 %vm480_vm2, %v2972_v24  ;;  %v647_v16 = vadd.f32 %v646_v37, %v3737_v17  ;;  %v1515_v17 = vpack.c.b16 %v1502_v8, %v1501_v1  ;;  %v1873_v23 = vsel %vm3314_vm3, %v1868_v46, %v1872_v55 }
  0xe3   : > { %v1883_v24 = vsel %vm3314_vm3, %v1878_v0, %v1882_v2  ;;  %v2185_v41 = vrot.slane %v3777_v56, 5  ;;  %v1894_v55 = vshll.u32 %v3795_v51, 16  ;;  %v1898_v37 = vshrl.u32 %v3795_v51, 16  ;;  %v2866_v2 = vld [vmem:[%s3286_s23 + $0x44] sm:$0x1] }
  0xe4   : > { %v3790_v28 = vadd.f32 %v1350_v59, %v1043_v48  ;;  %v2752_v59 = vld [vmem:[%s3286_s23 + $0x30] sm:$0xe]  ;;  %v2014_v10 = vunpack.c.l.b16 %v1883_v24  ;;  %v1461_v48 = vrot.slane %v1459_v20, 4  ;;  %v1887_v1 = vrot.slane %v1885_v36, 4  ;;  %v2902_v36 = vld [vmem:[%s3286_s23 + $0x3c] sm:$0xe] }
  0xe5   : > { %v841_v11 = vpop.f32.mrf.mxu2  ;;  %v2760_v45 = vrot.slane %v2752_v59, 9  ;;  %v1890_v8 = vrot.slane %v1888_v40, 5  ;;  %v2186_v5 = vsel %vm3440_vm6, %v2184_v19, %v2185_v41  ;;  %v1896_v46 = vrot.slane %v1894_v55, 5 }
  0xe6   : > { %2892 = vmatmul.msk.bf16.gmra.mxu3 %vm480_vm2, %v2026_v44  ;;  %v878_v60 = vadd.f32 %v841_v11, %v645_v18  ;;  %v2909_v18 = vrot.slane %v2901_v47, 9  ;;  %v1900_v0 = vrot.slane %v1898_v37, 4  ;;  %v1904_v24 = vshll.u32 %v2866_v2, 16  ;;  %v3829_v37 = vld [vmem:[%s3286_s23 + $0x4c] sm:$0xf] }
  0xe7   : > { %v1353_v6 = vpop.f32.mrf.mxu0 }
  0xe8   : > { %v2183_v56 = vsel %vm3440_vm6, %v2909_v18, %v2182_v42  ;;  %v1463_v42 = vsel %vm3440_vm6, %v1461_v48, %v1462_v53  ;;  %v2189_v18 = vrot.slane %v3795_v51, 5  ;;  %v2192_v48 = vrot.slane %v2866_v2, 5 }
  0xe9   : > { %v1007_v14 = vpop.f32.mrf.mxu3  ;;  %v649_v38 = vpop.f32.mrf.mxu1  ;;  %v2231_v47 = vunpack.c.l.b16 %v2183_v56  ;;  %v1504_v59 = vunpack.c.l.b16 %v1463_v42 }
  0xea   : > { %2928 = vmatmul.msk.bf16.gmra.mxu0 %vm480_vm2, %v2244_v57  ;;  %v1044_v29 = vadd.f32 %v1007_v14, %v878_v60  ;;  %v650_v34 = vadd.f32 %v649_v38, %v3630_v4  ;;  %v2013_v4 = vunpack.c.l.b16 %v1873_v23  ;;  %v1891_v38 = vor.u32 %v1890_v8, %v1887_v1 }
  0xeb   : > { %v1901_v23 = vor.u32 %v1900_v0, %v1896_v46  ;;  %v2191_v51 = vrot.slane %v2189_v18, 4  ;;  %v1466_v8 = vrot.slane %v3558_v30, 5 }
  0xec   : > { %2779 = vmatmul.msk.bf16.gmra.mxu1 %vm480_vm2, %v1515_v17  ;;  %v3810_v39 = vadd.f32 %v1353_v6, %v1044_v29  ;;  %v2027_v60 = vpack.c.b16 %v2014_v10, %v2013_v4  ;;  %v2232_v17 = vunpack.c.l.b16 %v2186_v5  ;;  %v1892_v55 = vrot.slane %v1891_v38, 4 }
  0xed   : > { %v843_v27 = vpop.f32.mrf.mxu2  ;;  %v1906_v4 = vrot.slane %v1904_v24, 5  ;;  %v2910_v10 = vrot.slane %v2902_v36, 9  ;;  %v1922_v5 = vshrl.u32 %v3829_v37, 16  ;;  %v2974_v24 = vld [vmem:[%s3286_s23 + $0x3c] sm:$0xff]  ;;  %v3855_v36 = vld [vmem:[%s3286_s23 + $0x50] sm:$0x1] }
  0xee   : > { %v879_v44 = vadd.f32 %v843_v27, %v647_v16  ;;  %v1460_v16 = vsel %vm3440_vm6, %v2760_v45, %v1459_v20  ;;  %v2867_v20 = vld [vmem:[%s3286_s23 + $0x48] sm:$0xf]  ;;  %v2245_v19 = vpack.c.b16 %v2232_v17, %v2231_v47  ;;  %v1902_v27 = vrot.slane %v1901_v23, 4 }
  0xef   : > { %v1355_v11 = vpop.f32.mrf.mxu0  ;;  %v1503_v29 = vunpack.c.l.b16 %v1460_v16  ;;  %v1897_v2 = vsel %vm3314_vm3, %v1892_v55, %v1896_v46  ;;  %v2190_v30 = vsel %vm3440_vm6, %v2910_v10, %v2189_v18  ;;  %v1468_v17 = vrot.slane %v1466_v8, 4 }
  0xf0   : > { %v1907_v47 = vsel %vm3314_vm3, %v1902_v27, %v1906_v4  ;;  %v1924_v38 = vrot.slane %v1922_v5, 4 }
  0xf1   : > { %v1009_v57 = vpop.f32.mrf.mxu3  ;;  %v651_v6 = vpop.f32.mrf.mxu1  ;;  %v1516_v45 = vpack.c.b16 %v1504_v59, %v1503_v29  ;;  %v2015_v29 = vunpack.c.l.b16 %v1897_v2  ;;  %v2016_v18 = vunpack.c.l.b16 %v1907_v47  ;;  %v2196_v2 = vrot.slane %v3829_v37, 5 }
  0xf2   : > { %v1045_v12 = vadd.f32 %v1009_v57, %v879_v44  ;;  %2849 = vmatmul.msk.bf16.gmra.mxu2 %vm480_vm2, %v2973_v49  ;;  %v652_v14 = vadd.f32 %v651_v6, %v3649_v35  ;;  %v1909_v44 = vshrl.u32 %v2867_v20, 16  ;;  %v1912_v49 = vshll.u32 %v2867_v20, 16  ;;  %v2753_v57 = vld [vmem:[%s3286_s23 + $0x3c] sm:$0xe] }
  0xf3   : > { %v2193_v6 = vsel %vm3440_vm6, %v2191_v51, %v2192_v48  ;;  %v2028_v10 = vpack.c.b16 %v2016_v18, %v2015_v29  ;;  %v2198_v29 = vrot.slane %v2196_v2, 4  ;;  %v2199_v18 = vrot.slane %v3855_v36, 5 }
  0xf4   : > { %v3831_v53 = vadd.f32 %v1355_v11, %v1045_v12  ;;  %v1914_v16 = vrot.slane %v1912_v49, 5  ;;  %v2761_v12 = vrot.slane %v2753_v57, 9  ;;  %v2234_v20 = vunpack.c.l.b16 %v2193_v6  ;;  %v2870_v49 = vld [vmem:[%s3286_s23 + $0x54] sm:$0xf] }
  0xf5   : > { %v846_v40 = vpop.f32.mrf.mxu2  ;;  %v1936_v6 = vshll.u32 %v2870_v49, 16 }
  0xf6   : > { %2893 = vmatmul.msk.bf16.gmra.mxu3 %vm480_vm2, %v2027_v60  ;;  %v880_v41 = vadd.f32 %v846_v40, %v650_v34  ;;  %v1918_v34 = vshll.u32 %v3829_v37, 16  ;;  %v1469_v60 = vrot.slane %v3573_v43, 5  ;;  %v2233_v40 = vunpack.c.l.b16 %v2190_v30 }
  0xf7   : > { %v1358_v35 = vpop.f32.mrf.mxu0  ;;  %v1467_v55 = vsel %vm3440_vm6, %v2761_v12, %v1466_v8  ;;  %v1933_v30 = vshrl.u32 %v2870_v49, 16  ;;  %v1473_v37 = vrot.slane %v3586_v58, 5  ;;  %v1476_v58 = vrot.slane %v3600_v21, 5 }
  0xf8   : > { %v3851_v46 = vrot.slane %v1918_v34, 5  ;;  %v1505_v48 = vunpack.c.l.b16 %v1467_v55  ;;  %v2200_v49 = vsel %vm3440_vm6, %v2198_v29, %v2199_v18  ;;  %v2873_v29 = vld [vmem:[%s3286_s23 + $0x60] sm:$0xf] }
  0xf9   : > { %v1012_v56 = vpop.f32.mrf.mxu3  ;;  %v654_v1 = vpop.f32.mrf.mxu1 }
  0xfa   : > { %2929 = vmatmul.msk.bf16.gmra.mxu0 %vm480_vm2, %v2245_v19  ;;  %v1046_v11 = vadd.f32 %v1012_v56, %v880_v41  ;;  %v655_v0 = vadd.f32 %v654_v1, %v3677_v31  ;;  %v1911_v31 = vrot.slane %v1909_v44, 4  ;;  %v3867_v56 = vld [vmem:[%s3286_s23 + $0x58] sm:$0xf]  ;;  %v2246_v1 = vpack.c.b16 %v2234_v20, %v2233_v40 }
  0xfb   : > { %v1935_v40 = vrot.slane %v1933_v30, 4  ;;  %v1938_v20 = vrot.slane %v1936_v6, 5 }
  0xfc   : > { %2780 = vmatmul.msk.bf16.gmra.mxu1 %vm480_vm2, %v1516_v45  ;;  %v3849_v42 = vadd.f32 %v1358_v35, %v1046_v11  ;;  %v1470_v35 = vsel %vm3440_vm6, %v1468_v17, %v1469_v60  ;;  %v1915_v27 = vor.u32 %v1914_v16, %v1911_v31  ;;  %v1928_v45 = vshll.u32 %v3855_v36, 16  ;;  %v2903_v60 = vld [vmem:[%s3286_s23 + $0x48] sm:$0xe] }
  0xfd   : > { %v848_v43 = vpop.f32.mrf.mxu2  ;;  %v1506_v44 = vunpack.c.l.b16 %v1470_v35  ;;  %v1942_v31 = vshll.u32 %v3867_v56, 16  ;;  %v1946_v16 = vshrl.u32 %v3867_v56, 16 }
  0xfe   : > { %v881_v23 = vadd.f32 %v848_v43, %v652_v14  ;;  %v1925_v14 = vor.u32 %v1924_v38, %v3851_v46  ;;  %v1916_v34 = vrot.slane %v1915_v27, 4  ;;  %v1930_v57 = vrot.slane %v1928_v45, 5 }
  0xff   : > { %v1360_v59 = vpop.f32.mrf.mxu0  ;;  %v1517_v43 = vpack.c.b16 %v1506_v44, %v1505_v48  ;;  %v2911_v38 = vrot.slane %v2903_v60, 9  ;;  %v1475_v27 = vrot.slane %v1473_v37, 4 }
 0x100   : > { %v1926_v5 = vrot.slane %v1925_v14, 4  ;;  %v3890_v14 = vld [vmem:[%s3286_s23 + $0x5c] sm:$0x1] }
 0x101   : > { %v1014_v19 = vpop.f32.mrf.mxu3  ;;  %v656_v41 = vpop.f32.mrf.mxu1  ;;  %v2197_v44 = vsel %vm3440_vm6, %v2911_v38, %v2196_v2  ;;  %v1952_v21 = vshll.u32 %v3890_v14, 16  ;;  %v2904_v38 = vld [vmem:[%s3286_s23 + $0x54] sm:$0xe] }
 0x102   : > { %v1047_v4 = vadd.f32 %v1014_v19, %v881_v23  ;;  %2850 = vmatmul.msk.bf16.gmra.mxu2 %vm480_vm2, %v2974_v24  ;;  %v657_v51 = vadd.f32 %v656_v41, %v3697_v15  ;;  %v1931_v24 = vsel %vm3314_vm3, %v1926_v5, %v1930_v57  ;;  %v1944_v19 = vrot.slane %v1942_v31, 5 }
 0x103   : > { %v1948_v41 = vrot.slane %v1946_v16, 4  ;;  %v2018_v36 = vunpack.c.l.b16 %v1931_v24  ;;  %v2235_v2 = vunpack.c.l.b16 %v2197_v44  ;;  %v1483_v44 = vrot.slane %v3627_v3, 5 }
 0x104   : > { %v3872_v47 = vadd.f32 %v1360_v59, %v1047_v4  ;;  %v2754_v59 = vld [vmem:[%s3286_s23 + $0x48] sm:$0xe] }
 0x105   : > { %v851_v8 = vpop.f32.mrf.mxu2  ;;  %v2762_v35 = vrot.slane %v2754_v59, 9 }
 0x106   : > { %2894 = vmatmul.msk.bf16.gmra.mxu3 %vm480_vm2, %v2028_v10  ;;  %v882_v11 = vadd.f32 %v851_v8, %v655_v0  ;;  %v1921_v0 = vsel %vm3314_vm3, %v1916_v34, %v3851_v46  ;;  %v2975_v10 = vld [vmem:[%s3286_s23 + $0x48] sm:$0xff]  ;;  %v1949_v8 = vor.u32 %v1948_v41, %v1944_v19  ;;  %v2912_v41 = vrot.slane %v2904_v38, 9 }
 0x107   : > { %v1363_v15 = vpop.f32.mrf.mxu0  ;;  %v2017_v45 = vunpack.c.l.b16 %v1921_v0 }
 0x108   : > { %v1950_v6 = vrot.slane %v1949_v8, 4 }
 0x109   : > { %v1017_v12 = vpop.f32.mrf.mxu3  ;;  %v659_v17 = vpop.f32.mrf.mxu1  ;;  %v2029_v60 = vpack.c.b16 %v2018_v36, %v2017_v45  ;;  %v2206_v45 = vrot.slane %v3890_v14, 5  ;;  %v2755_v36 = vld [vmem:[%s3286_s23 + $0x54] sm:$0xe] }
 0x10a   : > { %2930 = vmatmul.msk.bf16.gmra.mxu0 %vm480_vm2, %v2246_v1  ;;  %v1048_v23 = vadd.f32 %v1017_v12, %v882_v11  ;;  %v1939_v1 = vor.u32 %v1938_v20, %v1935_v40  ;;  %v1477_v11 = vsel %vm3440_vm6, %v1475_v27, %v1476_v58  ;;  %v660_v31 = vadd.f32 %v659_v17, %v3654_v52  ;;  %v3911_v40 = vld [vmem:[%s3286_s23 + $0x64] sm:$0xf] }
 0x10b   : > { %v1954_v12 = vrot.slane %v1952_v21, 5  ;;  %v1957_v27 = vshrl.u32 %v2873_v29, 16 }
 0x10c   : > { %2781 = vmatmul.msk.bf16.gmra.mxu1 %vm480_vm2, %v1517_v43  ;;  %v3886_v46 = vadd.f32 %v1363_v15, %v1048_v23  ;;  %v2236_v15 = vunpack.c.l.b16 %v2200_v49  ;;  %v1940_v30 = vrot.slane %v1939_v1, 4  ;;  %v1508_v43 = vunpack.c.l.b16 %v1477_v11 }
 0x10d   : > { %v853_v55 = vpop.f32.mrf.mxu2  ;;  %v1955_v17 = vsel %vm3314_vm3, %v1950_v6, %v1954_v12  ;;  %v1959_v11 = vrot.slane %v1957_v27, 4 }
 0x10e   : > { %v883_v4 = vadd.f32 %v853_v55, %v657_v51  ;;  %v1474_v51 = vsel %vm3440_vm6, %v2762_v35, %v1473_v37  ;;  %v2203_v37 = vrot.slane %v3867_v56, 5  ;;  %v2247_v23 = vpack.c.b16 %v2236_v15, %v2235_v2  ;;  %v2976_v2 = vld [vmem:[%s3286_s23 + $0x54] sm:$0xff] }
 0x10f   : > { %v1365_v48 = vpop.f32.mrf.mxu0  ;;  %v1507_v16 = vunpack.c.l.b16 %v1474_v51  ;;  %v1945_v52 = vsel %vm3314_vm3, %v1940_v30, %v1944_v19  ;;  %v1480_v35 = vrot.slane %v3612_v63, 5  ;;  %v1966_v19 = vshll.u32 %v3911_v40, 16  ;;  %v2875_v30 = vld [vmem:[%s3286_s23 + $0x68] sm:$0x1] }
 0x110   : > { %v2205_v55 = vrot.slane %v2203_v37, 4  ;;  %v2019_v49 = vunpack.c.l.b16 %v1945_v52  ;;  %v2020_v63 = vunpack.c.l.b16 %v1955_v17  ;;  %v2204_v8 = vsel %vm3440_vm6, %v2912_v41, %v2203_v37 }
 0x111   : > { %v1019_v34 = vpop.f32.mrf.mxu3  ;;  %v661_v5 = vpop.f32.mrf.mxu1  ;;  %v1518_v20 = vpack.c.b16 %v1508_v43, %v1507_v16  ;;  %v1482_v51 = vrot.slane %v1480_v35, 4  ;;  %v2237_v6 = vunpack.c.l.b16 %v2204_v8 }
 0x112   : > { %v1049_v57 = vadd.f32 %v1019_v34, %v883_v4  ;;  %2851 = vmatmul.msk.bf16.gmra.mxu2 %vm480_vm2, %v2975_v10  ;;  %v1960_v4 = vshll.u32 %v2873_v29, 16  ;;  %v662_v1 = vadd.f32 %v661_v5, %v3684_v13  ;;  %v2763_v34 = vrot.slane %v2755_v36, 9 }
 0x113   : > { %v2207_v3 = vsel %vm3440_vm6, %v2205_v55, %v2206_v45  ;;  %v1968_v13 = vrot.slane %v1966_v19, 5  ;;  %v1976_v29 = vshll.u32 %v2875_v30, 16  ;;  %v2210_v36 = vrot.slane %v3911_v40, 5  ;;  %v2876_v19 = vld [vmem:[%s3286_s23 + $0x6c] sm:$0xf] }
 0x114   : > { %v3908_v18 = vadd.f32 %v1365_v48, %v1049_v57  ;;  %v1970_v48 = vshrl.u32 %v3911_v40, 16  ;;  %v1962_v57 = vrot.slane %v1960_v4, 5  ;;  %v2238_v16 = vunpack.c.l.b16 %v2207_v3  ;;  %v2905_v4 = vld [vmem:[%s3286_s23 + $0x60] sm:$0xe] }
 0x115   : > { %v856_v0 = vpop.f32.mrf.mxu2  ;;  %v1481_v12 = vsel %vm3440_vm6, %v2763_v34, %v1480_v35  ;;  %v1978_v27 = vrot.slane %v1976_v29, 5  ;;  %v2756_v34 = vld [vmem:[%s3286_s23 + $0x60] sm:$0xe]  ;;  %v1981_v40 = vshrl.u32 %v2876_v19, 16  ;;  %v1490_v3 = vrot.slane %v3660_v50, 5 }
 0x116   : > { %2895 = vmatmul.msk.bf16.gmra.mxu3 %vm480_vm2, %v2029_v60  ;;  %v884_v24 = vadd.f32 %v856_v0, %v660_v31  ;;  %v1972_v5 = vrot.slane %v1970_v48, 4  ;;  %v1484_v0 = vsel %vm3440_vm6, %v1482_v51, %v1483_v44  ;;  %v1963_v38 = vor.u32 %v1962_v57, %v1959_v11 }
 0x117   : > { %v1368_v59 = vpop.f32.mrf.mxu0  ;;  %v1510_v52 = vunpack.c.l.b16 %v1484_v0  ;;  %v2248_v17 = vpack.c.b16 %v2238_v16, %v2237_v6  ;;  %v1984_v51 = vshll.u32 %v2876_v19, 16  ;;  %v2212_v11 = vrot.slane %v2210_v36, 4 }
 0x118   : > { %v2213_v57 = vrot.slane %v2875_v30, 5  ;;  %v2977_v30 = vld [vmem:[%s3286_s23 + $0x60] sm:$0xff] }
 0x119   : > { %v1022_v56 = vpop.f32.mrf.mxu3  ;;  %v664_v58 = vpop.f32.mrf.mxu1 }
 0x11a   : > { %2931 = vmatmul.msk.bf16.gmra.mxu0 %vm480_vm2, %v2247_v23  ;;  %v1050_v10 = vadd.f32 %v1022_v56, %v884_v24  ;;  %v2030_v23 = vpack.c.b16 %v2020_v63, %v2019_v49  ;;  %v1973_v24 = vor.u32 %v1972_v5, %v1968_v13  ;;  %v1964_v56 = vrot.slane %v1963_v38, 4 }
 0x11b   : > { %v1487_v63 = vrot.slane %v3641_v22, 5  ;;  %v1983_v38 = vrot.slane %v1981_v40, 4 }
 0x11c   : > { %2782 = vmatmul.msk.bf16.gmra.mxu1 %vm480_vm2, %v1518_v20  ;;  %v3928_v21 = vadd.f32 %v1368_v59, %v1050_v10  ;;  %v665_v59 = vadd.f32 %v664_v58, %v3705_v61  ;;  %v1509_v20 = vunpack.c.l.b16 %v1481_v12  ;;  %v1974_v35 = vrot.slane %v1973_v24, 4  ;;  %v3947_v58 = vld [vmem:[%s3286_s23 + $0x70] sm:$0xf]  ;;  %v2878_v24 = vld [vmem:[%s3286_s23 + $0x74] sm:$0x1] }
 0x11d   : > { %v858_v14 = vpop.f32.mrf.mxu2  ;;  %v1969_v49 = vsel %vm3314_vm3, %v1964_v56, %v1968_v13  ;;  %v1489_v16 = vrot.slane %v1487_v63, 4  ;;  %v2217_v40 = vrot.slane %v3947_v58, 5 }
 0x11e   : > { %v885_v60 = vadd.f32 %v858_v14, %v662_v1  ;;  %v1519_v61 = vpack.c.b16 %v1510_v52, %v1509_v20  ;;  %v2913_v1 = vrot.slane %v2905_v4, 9  ;;  %v1979_v14 = vsel %vm3314_vm3, %v1974_v35, %v1978_v27 }
 0x11f   : > { %v1370_v15 = vpop.f32.mrf.mxu0  ;;  %v2022_v6 = vunpack.c.l.b16 %v1979_v14  ;;  %v2000_v4 = vshll.u32 %v2878_v24, 16 }
 0x120   : > { %v2211_v0 = vsel %vm3440_vm6, %v2913_v1, %v2210_v36 }
 0x121   : > { %v1024_v31 = vpop.f32.mrf.mxu3  ;;  %v666_v43 = vpop.f32.mrf.mxu1 }
 0x122   : > { %v1051_v37 = vadd.f32 %v1024_v31, %v885_v60  ;;  %2852 = vmatmul.msk.bf16.gmra.mxu2 %vm480_vm2, %v2976_v2  ;;  %v1990_v60 = vshll.u32 %v3947_v58, 16  ;;  %v1994_v2 = vshrl.u32 %v3947_v58, 16  ;;  %v667_v22 = vadd.f32 %v666_v43, %v3729_v25 }
 0x123   : > { %v2764_v31 = vrot.slane %v2756_v34, 9  ;;  %v2214_v25 = vsel %vm3440_vm6, %v2212_v11, %v2213_v57  ;;  %v2002_v34 = vrot.slane %v2000_v4, 5  ;;  %v2906_v11 = vld [vmem:[%s3286_s23 + $0x6c] sm:$0xe] }
 0x124   : > { %v3942_v10 = vadd.f32 %v1370_v15, %v1051_v37  ;;  %v2021_v15 = vunpack.c.l.b16 %v1969_v49  ;;  %v1986_v37 = vrot.slane %v1984_v51, 5  ;;  %v1992_v43 = vrot.slane %v1990_v60, 5 }
 0x125   : > { %v861_v41 = vpop.f32.mrf.mxu2  ;;  %v1488_v52 = vsel %vm3440_vm6, %v2764_v31, %v1487_v63 }
 0x126   : > { %2896 = vmatmul.msk.bf16.gmra.mxu3 %vm480_vm2, %v2030_v23  ;;  %v886_v55 = vadd.f32 %v861_v41, %v665_v59  ;;  %v1996_v23 = vrot.slane %v1994_v2, 4  ;;  %v2239_v59 = vunpack.c.l.b16 %v2211_v0  ;;  %v2031_v56 = vpack.c.b16 %v2022_v6, %v2021_v15 }
 0x127   : > { %v1373_v45 = vpop.f32.mrf.mxu0  ;;  %v1987_v35 = vor.u32 %v1986_v37, %v1983_v38  ;;  %v1511_v36 = vunpack.c.l.b16 %v1488_v52 }
 0x128   : > { %v1997_v27 = vor.u32 %v1996_v23, %v1992_v43 }
 0x129   : > { %v1027_v48 = vpop.f32.mrf.mxu3  ;;  %v669_v44 = vpop.f32.mrf.mxu1  ;;  %v1988_v63 = vrot.slane %v1987_v35, 4 }
 0x12a   : > { %2932 = vmatmul.msk.bf16.gmra.mxu0 %vm480_vm2, %v2248_v17  ;;  %v1052_v8 = vadd.f32 %v1027_v48, %v886_v55  ;;  %v1491_v17 = vsel %vm3440_vm6, %v1489_v16, %v1490_v3  ;;  %v2240_v55 = vunpack.c.l.b16 %v2214_v25  ;;  %v1998_v14 = vrot.slane %v1997_v27, 4  ;;  %v2978_v16 = vld [vmem:[%s3286_s23 + $0x6c] sm:$0xff]  ;;  %s2442_s23 = sshll.u32 %s2439_s11, 4  ;;  %s2443_s23 = int_to_ptr.hbm [resolvable:$true] %s2442_s23 }
 0x12b   : > { %v1512_v19 = vunpack.c.l.b16 %v1491_v17  ;;  %v1993_v60 = vsel %vm3314_vm3, %v1988_v63, %v1992_v43  ;;  %v2914_v3 = vrot.slane %v2906_v11, 9  ;;  %v4015_v11 = vld [vmem:[%s4133_s3] ss:$0 sm:$0xff]  ;;  %s3082_s24 = sshra.s32 %s2443_s23, 4  ;;  %s3083_s24 = int_to_ptr.hbm [resolvable:$true] %s3082_s24 }
 0x12c   : > { %2783 = vmatmul.msk.bf16.gmra.mxu1 %vm480_vm2, %v1519_v61  ;;  %v3961_v13 = vadd.f32 %v1373_v45, %v1052_v8  ;;  %v670_v45 = vadd.f32 %v669_v44, %v3664_v54  ;;  %v2249_v49 = vpack.c.b16 %v2240_v55, %v2239_v59  ;;  %v2003_v2 = vsel %vm3314_vm3, %v1998_v14, %v2002_v34  ;;  %s3084_s27 = scalar_lea.hbm %s3083_s24, 128  ;;  %p3089_p2 = scmp.lt.s32.totalorder %s3083_s24, %s4134_s4 }
 0x12d   : > { %v863_v5 = vpop.f32.mrf.mxu2  ;;  %v1520_v51 = vpack.c.b16 %v1512_v19, %v1511_v36  ;;  %v2218_v38 = vsel %vm3440_vm6, %v2914_v3, %v2217_v40  ;;  %p3085_p13 = scmp.ne.s32.totalorder %s3083_s24, %s3084_s27  ;;  %p3090_p4 = scmp.lt.s32.totalorder %s3088_s8, %s3084_s27 }
 0x12e   : > { %v887_v12 = vadd.f32 %v863_v5, %v667_v22  ;;  %v2219_v22 = vrot.slane %v2217_v40, 4  ;;  %v2220_v5 = vrot.slane %v2878_v24, 5  ;;  %v2241_v43 = vunpack.c.l.b16 %v2218_v38  ;;  %v4009_v40 = vld [vmem:[%s4132_s2] ss:$0 sm:$0xff] }
 0x12f   : > { %v1375_v50 = vpop.f32.mrf.mxu0  ;;  %p3086_p0 = pnand %p3085_p13, %p3242_p3  ;;  %p3091_p5 = por %p3090_p4, %p3089_p2 }
 0x130   : > { %v2221_v32 = vsel %vm3440_vm6, %v2219_v22, %v2220_v5 }
 0x131   : > { %v1029_v29 = vpop.f32.mrf.mxu3  ;;  %v671_v20 = vpop.f32.mrf.mxu1  ;;  %v2242_v23 = vunpack.c.l.b16 %v2221_v32  ;;  %p3087_p1 = pneg %p3086_p0 }
 0x132   : > { %v1053_v41 = vadd.f32 %v1029_v29, %v887_v12  ;;  %2853 = vmatmul.msk.bf16.gmra.mxu2 %vm480_vm2, %v2977_v30  ;;  %v672_v15 = vadd.f32 %v671_v20, %v3690_v7  ;;  %v2023_v12 = vunpack.c.l.b16 %v1993_v60  ;;  %v2024_v30 = vunpack.c.l.b16 %v2003_v2 }
 0x133   : > { %v2250_v20 = vpack.c.b16 %v2242_v23, %v2241_v43  ;;  %p3092_p6 = pnand %p3091_p5, %p3087_p1 }
 0x134   : > { %v3975_v61 = vadd.f32 %v1375_v50, %v1053_v41  ;;  %v2032_v7 = vpack.c.b16 %v2024_v30, %v2023_v12 }
 0x135   : > { %v866_v48 = vpop.f32.mrf.mxu2 }
 0x136   : > { %2897 = vmatmul.msk.bf16.gmra.mxu3 %vm480_vm2, %v2031_v56  ;;  %v888_v1 = vadd.f32 %v866_v48, %v670_v45 }
 0x137   : > { %v1378_v8 = vpop.f32.mrf.mxu0 }
 0x139   : > { %v1032_v57 = vpop.f32.mrf.mxu3  ;;  %v674_v54 = vpop.f32.mrf.mxu1 }
 0x13a   : > { %2933 = vmatmul.msk.bf16.gmra.mxu0 %vm480_vm2, %v2249_v49  ;;  %v1054_v44 = vadd.f32 %v1032_v57, %v888_v1  ;;  %v675_v24 = vadd.f32 %v674_v54, %v3716_v26 }
 0x13c   : > { %2784 = vmatmul.msk.bf16.gmra.mxu1 %vm480_vm2, %v1520_v51  ;;  %v3987_v58 = vadd.f32 %v1378_v8, %v1054_v44 }
 0x13d   : > { %v868_v6 = vpop.f32.mrf.mxu2 }
 0x13e   : > { %v889_v31 = vadd.f32 %v868_v6, %v672_v15 }
 0x13f   : > { %v1380_v0 = vpop.f32.mrf.mxu0 }
 0x141   : > { %v1034_v37 = vpop.f32.mrf.mxu3  ;;  %v676_v50 = vpop.f32.mrf.mxu1 }
 0x142   : > { %v1055_v25 = vadd.f32 %v1034_v37, %v889_v31  ;;  %2854 = vmatmul.msk.bf16.gmra.mxu2 %vm480_vm2, %v2978_v16  ;;  %v677_v55 = vadd.f32 %v676_v50, %v3742_v62 }
 0x144   : > { %v3996_v29 = vadd.f32 %v1380_v0, %v1055_v25 }
 0x145   : > { %v871_v59 = vpop.f32.mrf.mxu2 }
 0x146   : > { %2898 = vmatmul.msk.bf16.gmra.mxu3 %vm480_vm2, %v2032_v7  ;;  %v890_v52 = vadd.f32 %v871_v59, %v675_v24 }
 0x147   : > { %v1383_v17 = vpop.f32.mrf.mxu0 }
 0x149   : > { %v1037_v33 = vpop.f32.mrf.mxu3  ;;  %v1566_v41 = vpop.f32.mrf.mxu1 }
 0x14a   : > { %2934 = vmatmul.msk.bf16.gmra.mxu0 %vm480_vm2, %v2250_v20  ;;  %v1056_v56 = vadd.f32 %v1037_v33, %v890_v52  ;;  %v1606_v48 = vadd.f32 %v1566_v41, %v3773_v9 }
 0x14c   : > { %v4001_v35 = vadd.f32 %v1383_v17, %v1056_v56 }
 0x14d   : > { %v873_v27 = vpop.f32.mrf.mxu2 }
 0x14e   : > { %v891_v26 = vadd.f32 %v873_v27, %v677_v55 }
 0x14f   : > { %v1385_v4 = vpop.f32.mrf.mxu0 }
 0x151   : > { %v1039_v45 = vpop.f32.mrf.mxu3  ;;  %v1568_v36 = vpop.f32.mrf.mxu1 }
 0x152   : > { %v1057_v19 = vadd.f32 %v1039_v45, %v891_v26  ;;  %v1607_v9 = vadd.f32 %v1568_v36, %v3790_v28 }
 0x154   : > { %v4004_v49 = vadd.f32 %v1385_v4, %v1057_v19 }
 0x155   : > { %v1732_v1 = vpop.f32.mrf.mxu2 }
 0x156   : > { %v1772_v63 = vadd.f32 %v1732_v1, %v1606_v48 }
 0x157   : > { %v2296_v8 = vpop.f32.mrf.mxu0 }
 0x159   : > { %v2078_v14 = vpop.f32.mrf.mxu3  ;;  %v1571_v34 = vpop.f32.mrf.mxu1 }
 0x15a   : > { %v2118_v62 = vadd.f32 %v2078_v14, %v1772_v63  ;;  %v1608_v28 = vadd.f32 %v1571_v34, %v3810_v39 }
 0x15c   : > { %v2336_v51 = vadd.f32 %v2296_v8, %v2118_v62 }
 0x15d   : > { %v1734_v57 = vpop.f32.mrf.mxu2 }
 0x15e   : > { %v2356_v54 = vmul.f32 %v4009_v40, %v2336_v51  ;;  %v1773_v44 = vadd.f32 %v1734_v57, %v1607_v9 }
 0x15f   : > { %v2298_v60 = vpop.f32.mrf.mxu0 }
 0x160   : > { %v2376_v2 = vadd.f32 %v4015_v11, %v2356_v54 }
 0x161   : > { %v2080_v3 = vpop.f32.mrf.mxu3  ;;  %v1573_v22 = vpop.f32.mrf.mxu1 }
 0x162   : > { %v2392_v5 = vmax.f32 %v2376_v2, 0.0  ;;  %v2119_v15 = vadd.f32 %v2080_v3, %v1773_v44  ;;  %v1609_v7 = vadd.f32 %v1573_v22, %v3831_v53 }
 0x164   : > { %2408 = vst [vmem:[%s4022_s5] sm:$0xff] %v2392_v5  ;;  %v2337_v6 = vadd.f32 %v2298_v60, %v2119_v15 }
 0x165   : > { %v1737_v31 = vpop.f32.mrf.mxu2 }
 0x166   : > { %v2357_v16 = vmul.f32 %v4009_v40, %v2337_v6  ;;  %v1774_v12 = vadd.f32 %v1737_v31, %v1608_v28 }
 0x167   : > { %v2301_v30 = vpop.f32.mrf.mxu0 }
 0x168   : > { %v2377_v0 = vadd.f32 %v4015_v11, %v2357_v16 }
 0x169   : > { %v2083_v38 = vpop.f32.mrf.mxu3  ;;  %v1576_v32 = vpop.f32.mrf.mxu1 }
 0x16a   : > { %v2393_v37 = vmax.f32 %v2377_v0, 0.0  ;;  %v2120_v50 = vadd.f32 %v2083_v38, %v1774_v12  ;;  %v1610_v56 = vadd.f32 %v1576_v32, %v3849_v42 }
 0x16c   : > { %2409 = vst [vmem:[%s4022_s5 + $0x8] sm:$0xff] %v2393_v37  ;;  %v2338_v25 = vadd.f32 %v2301_v30, %v2120_v50 }
 0x16d   : > { %v1739_v43 = vpop.f32.mrf.mxu2 }
 0x16e   : > { %v2358_v23 = vmul.f32 %v4009_v40, %v2338_v25  ;;  %v1775_v39 = vadd.f32 %v1739_v43, %v1609_v7 }
 0x16f   : > { %v2303_v24 = vpop.f32.mrf.mxu0 }
 0x170   : > { %v2378_v59 = vadd.f32 %v4015_v11, %v2358_v23 }
 0x171   : > { %v2085_v20 = vpop.f32.mrf.mxu3  ;;  %v1578_v52 = vpop.f32.mrf.mxu1 }
 0x172   : > { %v2394_v17 = vmax.f32 %v2378_v59, 0.0  ;;  %v2121_v33 = vadd.f32 %v2085_v20, %v1775_v39  ;;  %v1611_v63 = vadd.f32 %v1578_v52, %v3872_v47 }
 0x174   : > { %2410 = vst [vmem:[%s4022_s5 + $0x10] sm:$0xff] %v2394_v17  ;;  %v2339_v41 = vadd.f32 %v2303_v24, %v2121_v33 }
 0x175   : > { %v1742_v55 = vpop.f32.mrf.mxu2 }
 0x176   : > { %v2359_v27 = vmul.f32 %v4009_v40, %v2339_v41  ;;  %v1776_v53 = vadd.f32 %v1742_v55, %v1610_v56 }
 0x177   : > { %v2306_v26 = vpop.f32.mrf.mxu0 }
 0x178   : > { %v2379_v4 = vadd.f32 %v4015_v11, %v2359_v27 }
 0x179   : > { %v2088_v45 = vpop.f32.mrf.mxu3  ;;  %v1581_v36 = vpop.f32.mrf.mxu1 }
 0x17a   : > { %v2395_v19 = vmax.f32 %v2379_v4, 0.0  ;;  %v2122_v48 = vadd.f32 %v2088_v45, %v1776_v53  ;;  %v1612_v60 = vadd.f32 %v1581_v36, %v3886_v46 }
 0x17c   : > { %2411 = vst [vmem:[%s4022_s5 + $0x18] sm:$0xff] %v2395_v19  ;;  %v2340_v1 = vadd.f32 %v2306_v26, %v2122_v48 }
 0x17d   : > { %v1744_v8 = vpop.f32.mrf.mxu2 }
 0x17e   : > { %v2360_v14 = vmul.f32 %v4009_v40, %v2340_v1  ;;  %v1777_v42 = vadd.f32 %v1744_v8, %v1611_v63 }
 0x17f   : > { %v2308_v34 = vpop.f32.mrf.mxu0 }
 0x180   : > { %v2380_v62 = vadd.f32 %v4015_v11, %v2360_v14 }
 0x181   : > { %v2090_v51 = vpop.f32.mrf.mxu3  ;;  %v1583_v9 = vpop.f32.mrf.mxu1 }
 0x182   : > { %v2396_v57 = vmax.f32 %v2380_v62, 0.0  ;;  %v2123_v54 = vadd.f32 %v2090_v51, %v1777_v42  ;;  %v1613_v12 = vadd.f32 %v1583_v9, %v3908_v18 }
 0x184   : > { %2412 = vst [vmem:[%s4022_s5 + $0x20] sm:$0xff] %v2396_v57  ;;  %v2341_v44 = vadd.f32 %v2308_v34, %v2123_v54 }
 0x185   : > { %v1747_v2 = vpop.f32.mrf.mxu2 }
 0x186   : > { %v2361_v3 = vmul.f32 %v4009_v40, %v2341_v44  ;;  %v1778_v47 = vadd.f32 %v1747_v2, %v1612_v60 }
 0x187   : > { %v2311_v22 = vpop.f32.mrf.mxu0 }
 0x188   : > { %v2381_v5 = vadd.f32 %v4015_v11, %v2361_v3 }
 0x189   : > { %v2093_v15 = vpop.f32.mrf.mxu3  ;;  %v1586_v6 = vpop.f32.mrf.mxu1 }
 0x18a   : > { %v2397_v28 = vmax.f32 %v2381_v5, 0.0  ;;  %v2124_v31 = vadd.f32 %v2093_v15, %v1778_v47  ;;  %v1614_v23 = vadd.f32 %v1586_v6, %v3928_v21 }
 0x18c   : > { %2413 = vst [vmem:[%s4022_s5 + $0x28] sm:$0xff] %v2397_v28  ;;  %v2342_v16 = vadd.f32 %v2311_v22, %v2124_v31 }
 0x18d   : > { %v1749_v30 = vpop.f32.mrf.mxu2 }
 0x18e   : > { %v2362_v0 = vmul.f32 %v4009_v40, %v2342_v16  ;;  %v1779_v46 = vadd.f32 %v1749_v30, %v1613_v12 }
 0x18f   : > { %v2313_v38 = vpop.f32.mrf.mxu0 }
 0x190   : > { %v2382_v32 = vadd.f32 %v4015_v11, %v2362_v0 }
 0x191   : > { %v2095_v37 = vpop.f32.mrf.mxu3  ;;  %v1588_v50 = vpop.f32.mrf.mxu1 }
 0x192   : > { %v2398_v25 = vmax.f32 %v2382_v32, 0.0  ;;  %v2125_v7 = vadd.f32 %v2095_v37, %v1779_v46  ;;  %v1615_v55 = vadd.f32 %v1588_v50, %v3942_v10 }
 0x194   : > { %2414 = vst [vmem:[%s4022_s5 + $0x30] sm:$0xff] %v2398_v25  ;;  %v2343_v43 = vadd.f32 %v2313_v38, %v2125_v7 }
 0x195   : > { %v1752_v39 = vpop.f32.mrf.mxu2 }
 0x196   : > { %v2363_v24 = vmul.f32 %v4009_v40, %v2343_v43  ;;  %v1780_v18 = vadd.f32 %v1752_v39, %v1614_v23 }
 0x197   : > { %v2316_v59 = vpop.f32.mrf.mxu0 }
 0x198   : > { %v2383_v20 = vadd.f32 %v4015_v11, %v2363_v24 }
 0x199   : > { %v2098_v52 = vpop.f32.mrf.mxu3  ;;  %v1591_v17 = vpop.f32.mrf.mxu1 }
 0x19a   : > { %v2399_v33 = vmax.f32 %v2383_v20, 0.0  ;;  %v2126_v41 = vadd.f32 %v2098_v52, %v1780_v18  ;;  %v1616_v63 = vadd.f32 %v1591_v17, %v3961_v13 }
 0x19c   : > { %2415 = vst [vmem:[%s4022_s5 + $0x38] sm:$0xff] %v2399_v33  ;;  %v2344_v56 = vadd.f32 %v2316_v59, %v2126_v41 }
 0x19d   : > { %v1754_v27 = vpop.f32.mrf.mxu2 }
 0x19e   : > { %v2364_v53 = vmul.f32 %v4009_v40, %v2344_v56  ;;  %v1781_v21 = vadd.f32 %v1754_v27, %v1615_v55 }
 0x19f   : > { %v2318_v26 = vpop.f32.mrf.mxu0 }
 0x1a0   : > { %v2384_v4 = vadd.f32 %v4015_v11, %v2364_v53 }
 0x1a1   : > { %v2100_v45 = vpop.f32.mrf.mxu3  ;;  %v1593_v36 = vpop.f32.mrf.mxu1 }
 0x1a2   : > { %v2400_v19 = vmax.f32 %v2384_v4, 0.0  ;;  %v2127_v48 = vadd.f32 %v2100_v45, %v1781_v21  ;;  %v1617_v44 = vadd.f32 %v1593_v36, %v3975_v61 }
 0x1a4   : > { %2416 = vst [vmem:[%s4022_s5 + $0x40] sm:$0xff] %v2400_v19  ;;  %v2345_v1 = vadd.f32 %v2318_v26, %v2127_v48 }
 0x1a5   : > { %v1757_v8 = vpop.f32.mrf.mxu2 }
 0x1a6   : > { %v2365_v14 = vmul.f32 %v4009_v40, %v2345_v1  ;;  %v1782_v10 = vadd.f32 %v1757_v8, %v1616_v63 }
 0x1a7   : > { %v2321_v42 = vpop.f32.mrf.mxu0 }
 0x1a8   : > { %v2385_v34 = vadd.f32 %v4015_v11, %v2365_v14 }
 0x1a9   : > { %v2103_v62 = vpop.f32.mrf.mxu3  ;;  %v1596_v57 = vpop.f32.mrf.mxu1 }
 0x1aa   : > { %v2401_v51 = vmax.f32 %v2385_v34, 0.0  ;;  %v2128_v9 = vadd.f32 %v2103_v62, %v1782_v10  ;;  %v1618_v28 = vadd.f32 %v1596_v57, %v3987_v58 }
 0x1ac   : > { %2417 = vst [vmem:[%s4022_s5 + $0x48] sm:$0xff] %v2401_v51  ;;  %v2346_v54 = vadd.f32 %v2321_v42, %v2128_v9 }
 0x1ad   : > { %v1759_v60 = vpop.f32.mrf.mxu2 }
 0x1ae   : > { %v2366_v2 = vmul.f32 %v4009_v40, %v2346_v54  ;;  %v1783_v13 = vadd.f32 %v1759_v60, %v1617_v44 }
 0x1af   : > { %v2323_v3 = vpop.f32.mrf.mxu0 }
 0x1b0   : > { %v2386_v47 = vadd.f32 %v4015_v11, %v2366_v2 }
 0x1b1   : > { %v2105_v22 = vpop.f32.mrf.mxu3  ;;  %v1598_v31 = vpop.f32.mrf.mxu1 }
 0x1b2   : > { %v2402_v5 = vmax.f32 %v2386_v47, 0.0  ;;  %v2129_v15 = vadd.f32 %v2105_v22, %v1783_v13  ;;  %v1619_v50 = vadd.f32 %v1598_v31, %v3996_v29 }
 0x1b4   : > { %2418 = vst [vmem:[%s4022_s5 + $0x50] sm:$0xff] %v2402_v5  ;;  %v2347_v6 = vadd.f32 %v2323_v3, %v2129_v15 }
 0x1b5   : > { %v1762_v16 = vpop.f32.mrf.mxu2 }
 0x1b6   : > { %v2367_v12 = vmul.f32 %v4009_v40, %v2347_v6  ;;  %v1784_v61 = vadd.f32 %v1762_v16, %v1618_v28 }
 0x1b7   : > { %v2326_v30 = vpop.f32.mrf.mxu0 }
 0x1b8   : > { %v2387_v0 = vadd.f32 %v4015_v11, %v2367_v12 }
 0x1b9   : > { %v2108_v46 = vpop.f32.mrf.mxu3  ;;  %v1601_v43 = vpop.f32.mrf.mxu1 }
 0x1ba   : > { %v2403_v38 = vmax.f32 %v2387_v0, 0.0  ;;  %v2130_v32 = vadd.f32 %v2108_v46, %v1784_v61  ;;  %v1620_v52 = vadd.f32 %v1601_v43, %v4001_v35 }
 0x1bc   : > { %2419 = vst [vmem:[%s4022_s5 + $0x58] sm:$0xff] %v2403_v38  ;;  %v2348_v37 = vadd.f32 %v2326_v30, %v2130_v32 }
 0x1bd   : > { %v1764_v25 = vpop.f32.mrf.mxu2 }
 0x1be   : > { %v2368_v7 = vmul.f32 %v4009_v40, %v2348_v37  ;;  %v1785_v58 = vadd.f32 %v1764_v25, %v1619_v50 }
 0x1bf   : > { %v2328_v23 = vpop.f32.mrf.mxu0 }
 0x1c0   : > { %v2388_v39 = vadd.f32 %v4015_v11, %v2368_v7 }
 0x1c1   : > { %v2110_v24 = vpop.f32.mrf.mxu3  ;;  %v1603_v56 = vpop.f32.mrf.mxu1 }
 0x1c2   : > { %v2404_v18 = vmax.f32 %v2388_v39, 0.0  ;;  %v2131_v59 = vadd.f32 %v2110_v24, %v1785_v58  ;;  %v1621_v4 = vadd.f32 %v1603_v56, %v4004_v49 }
 0x1c4   : > { %2420 = vst [vmem:[%s4022_s5 + $0x60] sm:$0xff] %v2404_v18  ;;  %v2349_v20 = vadd.f32 %v2328_v23, %v2131_v59 }
 0x1c5   : > { %v1767_v17 = vpop.f32.mrf.mxu2 }
 0x1c6   : > { %v2369_v29 = vmul.f32 %v4009_v40, %v2349_v20  ;;  %v1786_v33 = vadd.f32 %v1767_v17, %v1620_v52 }
 0x1c7   : > { %v2331_v55 = vpop.f32.mrf.mxu0 }
 0x1c8   : > { %v2389_v41 = vadd.f32 %v4015_v11, %v2369_v29 }
 0x1c9   : > { %v2113_v27 = vpop.f32.mrf.mxu3 }
 0x1ca   : > { %v2405_v53 = vmax.f32 %v2389_v41, 0.0  ;;  %v2132_v21 = vadd.f32 %v2113_v27, %v1786_v33 }
 0x1cc   : > { %2421 = vst [vmem:[%s4022_s5 + $0x68] sm:$0xff] %v2405_v53  ;;  %v2350_v26 = vadd.f32 %v2331_v55, %v2132_v21 }
 0x1cd   : > { %v1769_v35 = vpop.f32.mrf.mxu2 }
 0x1ce   : > { %v2370_v45 = vmul.f32 %v4009_v40, %v2350_v26  ;;  %v1787_v36 = vadd.f32 %v1769_v35, %v1621_v4 }
 0x1cf   : > { %v2333_v8 = vpop.f32.mrf.mxu0 }
 0x1d0   : > { %v2390_v19 = vadd.f32 %v4015_v11, %v2370_v45 }
 0x1d1   : > { %v2115_v48 = vpop.f32.mrf.mxu3 }
 0x1d2   : > { %v2406_v1 = vmax.f32 %v2390_v19, 0.0  ;;  %v2133_v63 = vadd.f32 %v2115_v48, %v1787_v36 }
 0x1d4   : > { %2422 = vst [vmem:[%s4022_s5 + $0x70] sm:$0xff] %v2406_v1  ;;  %v2351_v14 = vadd.f32 %v2333_v8, %v2133_v63 }
 0x1d6   : > { %v2371_v49 = vmul.f32 %v4009_v40, %v2351_v14 }
 0x1d8   : > { %v2391_v10 = vadd.f32 %v4015_v11, %v2371_v49 }
 0x1da   : > { %v2407_v42 = vmax.f32 %v2391_v10, 0.0 }
 0x1dc   : > { %2423 = vst [vmem:[%s4022_s5 + $0x78] sm:$0xff] %v2407_v42 }
 0x1dd   : > { %3095 = shalt.err (!%p3092_p6)
}
 0x1de   : > { %s3164_s14 = smov 128   ;;  %s3165_s5 = smov 8  }
 0x1df   : > { %2993 = dma.vmem_to_hbm [thread:$0]  (%p3242_p3), %s2441_s12, 2048, %s2443_s23, %s2425_s13, %s3164_s14, %s3164_s14, %s3165_s5  }
 0x1e0 PF: > { %p2999_p7 = scmp.ge.s32.totalorder %s3162_s22, 2  ;;  %s2457_s18 = sand.u32 1, %s3134_s15  }
 0x1e1   : > { %s2458_s19 = scalar_lea.sflag [#allocation3], %s2457_s18 }
 0x1e2   : > { %p2996_p9 = pnand %p2999_p7, %p3251_p8 }
 0x1e4   : > { %p2997_p10 = pneg %p2996_p9 }
 0x1e6   : > { %3129 = dma.done.wait (%p2997_p10), %s2458_s19, 2048  }
 0x1e7   : > { %3131 = vsyncadd (%p2997_p10), %s2458_s19, 4294965248  ;;  %s17_s22 = sadd.s32 1, %s3162_s22   ;;  %s4141_s15 = smov %s3138_s16 }
 0x1e8   : > { %p14_p11 = scmp.ge.s32.totalorder %s17_s22, 6   ;;  %s4142_s16 = smov %s3142_s17 }
 0x1e9   : > { %s4143_s17 = smov %s3260_s7  ;;  %s4144_s18 = smov %s3154_s20 }
 0x1ea   : > { %s4145_s19 = smov %s3158_s21  ;;  %s4146_s20 = smov %s4149_s25 }
 0x1eb   : > { %s4147_s21 = smov %s4153_s26  ;;  %16 = sbr.rel (!%p14_p11) target bundleno = 5 (0x5), region = 82 }
 0x1f0   :  { %2464 = vsyncpa [#allocation3], 1 }
 0x1f1   :  { %2466 = vsyncpa [#allocation3 + $0x1], 1 }

</bundles_post_ra>
